<compile_context>
chip_gen: v7x
topology: tpu7x:2x2x1
jax: 0.10.0
libtpu: 0.0.40
codegen_flags: <defaults>
</compile_context>

<pallas_src>
import functools
import math

import jax
import jax.numpy as jnp
from jax.experimental import pallas as pl
from jax.experimental.pallas import tpu as pltpu


# ----------------------------------------------------------------------------
# Pallas kernel: packed complex matmul + bias + (optional) ReLU
# ----------------------------------------------------------------------------
def _complex_mm_kernel(p_ref, w_ref, b_ref, o_ref, *, apply_relu: bool):
    # One MXU matmul: bf16 x bf16 -> f32 accumulate, lane-dense (TM, Npad) out.
    acc = jnp.dot(p_ref[...], w_ref[...], preferred_element_type=jnp.float32)
    out = acc + b_ref[...]
    if apply_relu:
        out = jnp.maximum(out, 0.0)
    o_ref[...] = out


def _round_up(x, m):
    return ((x + m - 1) // m) * m


def _choose_tm(M, K, Npad):
    """Large tiles, but keep >=2 grid steps (v7x megacore) and a safe VMEM budget."""
    tm = 512
    while tm > 8 and M < 2 * tm:
        tm //= 2

    # VMEM estimate: double-buffered bf16 input tile + resident bf16 weights
    # + double-buffered f32 output tile + bias.  Stay well under the 32 MiB
    # default scoped limit (and v7x's 64 MiB physical VMEM).
    def vmem_bytes(t):
        return 2 * t * K * 2 + 2 * K * Npad * 2 + 2 * t * Npad * 4 + 2 * Npad * 4

    while tm > 8 and vmem_bytes(tm) > (20 << 20):
        tm //= 2
    return max(tm, 8)


def complex_matmul_pallas(ppack, wpack, bpack, relu):
    """ppack: (M, K) bf16 packed patches; wpack: (K, Npad) bf16; bpack: (1, Npad) f32.

    Returns (M, Npad) float32 = relu?(ppack @ wpack + bpack)."""
    M, K = ppack.shape
    Npad = wpack.shape[1]

    TM = _choose_tm(M, K, Npad)
    Mpad = _round_up(M, TM)
    if Mpad != M:
        ppack = jnp.pad(ppack, ((0, Mpad - M), (0, 0)))

    kernel = functools.partial(_complex_mm_kernel, apply_relu=relu)

    out = pl.pallas_call(
        kernel,
        out_shape=jax.ShapeDtypeStruct((Mpad, Npad), jnp.float32),
        grid_spec=pltpu.PrefetchScalarGridSpec(
            num_scalar_prefetch=0,
            grid=(Mpad // TM,),
            in_specs=[
                pl.BlockSpec((TM, K), lambda i: (i, 0)),     # packed patches (rows)
                pl.BlockSpec((K, Npad), lambda i: (0, 0)),   # packed weights (resident)
                pl.BlockSpec((1, Npad), lambda i: (0, 0)),   # packed bias (resident)
            ],
            out_specs=pl.BlockSpec((TM, Npad), lambda i: (i, 0)),
        ),
        compiler_params=pltpu.CompilerParams(dimension_semantics=("parallel",)),
    )(ppack, wpack, bpack)

    if Mpad != M:
        out = out[:M]
    return out


# ----------------------------------------------------------------------------
# Glue: im2col (real+imag together), conv wrapper, upsample, parameter packing
# ----------------------------------------------------------------------------
def _im2col(x, kh, kw, stride, padding):
    """x: (N, H, W, 2, C) -> patches (N*Ho*Wo, kh*kw*2*C) ordered (kh, kw, part, cin)."""
    N, H, W, P, C = x.shape
    xp = jnp.pad(x, ((0, 0), (padding, padding), (padding, padding), (0, 0), (0, 0)))
    Ho = (H + 2 * padding - kh) // stride + 1
    Wo = (W + 2 * padding - kw) // stride + 1
    cols = []
    for i in range(kh):
        for j in range(kw):
            cols.append(xp[:, i:i + stride * Ho:stride, j:j + stride * Wo:stride, :, :])
    patches = jnp.stack(cols, axis=3)                   # (N, Ho, Wo, kh*kw, 2, C)
    return patches.reshape(N * Ho * Wo, kh * kw * P * C), Ho, Wo


def complex_conv2d(x, p, stride, padding, relu):
    """x: (N, H, W, 2, Cin) internal layout. p: packed conv params."""
    N, H, W, _, Cin = x.shape
    KH = KW = p["k"]
    Cout = p["cout"]

    patches, Ho, Wo = _im2col(x, KH, KW, stride, padding)
    out = complex_matmul_pallas(patches.astype(jnp.bfloat16), p["w"], p["b"], relu)
    out = out[:, :2 * Cout].reshape(N, Ho, Wo, 2, Cout)
    return out


def nearest_upsample2x(x):
    # F.interpolate(scale_factor=(1,2,2), mode='nearest') in (N, H, W, 2, C) layout.
    x = jnp.repeat(x, 2, axis=1)
    x = jnp.repeat(x, 2, axis=2)
    return x


def init_complex_conv(key, in_c, out_c, k):
    k1, k2, k3, k4 = jax.random.split(key, 4)
    fan_in = in_c * k * k
    bound = 1.0 / math.sqrt(fan_in)
    return {
        "wr": jax.random.uniform(k1, (out_c, in_c, k, k), jnp.float32, -bound, bound),
        "wi": jax.random.uniform(k2, (out_c, in_c, k, k), jnp.float32, -bound, bound),
        "br": jax.random.uniform(k3, (out_c,), jnp.float32, -bound, bound),
        "bi": jax.random.uniform(k4, (out_c,), jnp.float32, -bound, bound),
    }


def pack_conv(raw):
    """PyTorch layout -> packed kernel layout (done ONCE at init).

    Wpack row order matches the (kh, kw, part, cin) ordering of _im2col patches:
        real-channel rows -> [ Wr | Wi ]
        imag-channel rows -> [-Wi | Wr ]
    Columns 0..Cout-1 give out_r, Cout..2*Cout-1 give out_i; zero-padded to 128."""
    wr, wi, br, bi = raw["wr"], raw["wi"], raw["br"], raw["bi"]
    Cout, Cin, KH, KW = wr.shape

    wr_t = jnp.transpose(wr, (2, 3, 1, 0))              # (KH, KW, Cin, Cout)
    wi_t = jnp.transpose(wi, (2, 3, 1, 0))
    rows_real = jnp.concatenate([wr_t, wi_t], axis=-1)  # (KH, KW, Cin, 2*Cout)
    rows_imag = jnp.concatenate([-wi_t, wr_t], axis=-1)
    wpack = jnp.stack([rows_real, rows_imag], axis=2)   # (KH, KW, 2, Cin, 2*Cout)
    K = KH * KW * 2 * Cin
    wpack = wpack.reshape(K, 2 * Cout)

    bpack = jnp.concatenate([br - bi, br + bi])         # (2*Cout,)

    Npad = _round_up(2 * Cout, 128)
    wpack = jnp.pad(wpack, ((0, 0), (0, Npad - 2 * Cout))).astype(jnp.bfloat16)
    bpack = jnp.pad(bpack, (0, Npad - 2 * Cout)).reshape(1, Npad).astype(jnp.float32)

    return {"w": wpack, "b": bpack, "k": KH, "cout": Cout}


def init_unet(key, in_chans, out_chans, chans, num_pool_layers):
    keys = iter(jax.random.split(key, 128))

    def conv_p(in_c, out_c, k):
        return pack_conv(init_complex_conv(next(keys), in_c, out_c, k))

    def block_p(in_c, out_c, stride):
        return {"stride": stride,
                "conv1": conv_p(in_c, out_c, 3),
                "conv2": conv_p(out_c, out_c, 3)}

    down = [block_p(in_chans, chans, 1)]
    ch = chans
    for _ in range(num_pool_layers - 1):
        down.append(block_p(ch, ch * 2, 2))
        ch *= 2
    mid = block_p(ch, ch, 2)

    upscale, up = [], []
    for _ in range(num_pool_layers - 1):
        upscale.append(conv_p(ch, ch, 3))
        up.append(block_p(ch * 2, ch // 2, 1))
        ch //= 2
    # for/else in the PyTorch __init__: always appends one more pair
    upscale.append(conv_p(ch, ch, 3))
    up.append(block_p(ch * 2, ch, 1))
    assert ch == chans, "Channel indexing error!"

    final = conv_p(chans, out_chans, 1)
    return {"down": down, "mid": mid, "upscale": upscale, "up": up,
            "final": final, "num_pool_layers": num_pool_layers}


# ----------------------------------------------------------------------------
# Module forward passes (composed from the Pallas conv kernel)
# ----------------------------------------------------------------------------
def conv_block(p, x):
    # ComplexConvBlock: conv(3x3, stride s) -> ReLU -> conv(3x3, stride 1) -> ReLU
    x = complex_conv2d(x, p["conv1"], stride=p["stride"], padding=1, relu=True)
    x = complex_conv2d(x, p["conv2"], stride=1, padding=1, relu=True)
    return x


def resize_conv(p, x):
    # ComplexResizeConv: nearest x2 upsample -> conv(3x3) -> ReLU
    x = nearest_upsample2x(x)
    return complex_conv2d(x, p, stride=1, padding=1, relu=True)


def complex_unet_forward(params, x):
    assert x.ndim == 5 and x.shape[1] == 2, "Invalid shape!"
    # Single layout conversion in, single conversion out: internal layout is
    # (N, H, W, 2, C) so per-conv NCHW<->NHWC transposes disappear.
    h0 = jnp.transpose(x, (0, 3, 4, 1, 2))               # (N, H, W, 2, C)

    stack = []
    out = h0
    for blk in params["down"]:
        out = conv_block(blk, out)
        stack.append(out)
    out = conv_block(params["mid"], out)
    for idx in range(params["num_pool_layers"]):
        out = resize_conv(params["upscale"][idx], out)
        out = jnp.concatenate([out, stack.pop()], axis=-1)   # cat on channel dim
        out = conv_block(params["up"][idx], out)
    out = complex_conv2d(out, params["final"], stride=1, padding=0, relu=False)

    # TODO(synk): residual add + layout transposes kept in plain JAX (cheap glue).
    out = h0 + out
    return jnp.transpose(out, (0, 3, 4, 1, 2))           # back to (N, 2, C, H, W)


# ----------------------------------------------------------------------------
# Driver
# ----------------------------------------------------------------------------
if __name__ == "__main__":
    key = jax.random.PRNGKey(0)
    k_params, k_input = jax.random.split(key)

    # Small config: ComplexUNet(in_chans=2, out_chans=2, chans=4, num_pool_layers=2)
    in_chans, out_chans, chans, num_pool_layers = 2, 2, 4, 2
    N, H, W = 2, 16, 16

    params = init_unet(k_params, in_chans, out_chans, chans, num_pool_layers)
    x = jax.random.normal(k_input, (N, 2, in_chans, H, W), jnp.float32)

    fwd = jax.jit(functools.partial(complex_unet_forward, params))
    y = fwd(x)
    jax.block_until_ready(y)

    assert y.shape == x.shape, (y.shape, x.shape)
    assert y.dtype == jnp.float32
    assert bool(jnp.all(jnp.isfinite(y)))
    print("KERNEL_OK")
</pallas_src>

<mosaic_0001>
module attributes {stable_mosaic.version = 11 : i64} {
  func.func @_complex_mm_kernel(%arg0: i32, %arg1: memref<256x36xbf16, #tpu.memory_space<vmem>>, %arg2: memref<36x128xbf16, #tpu.memory_space<vmem>>, %arg3: memref<1x128xf32, #tpu.memory_space<vmem>>, %arg4: memref<256x128xf32, #tpu.memory_space<vmem>>) attributes {dimension_semantics = [#tpu.dimension_semantics<parallel>], iteration_bounds = array<i64: 2>, scalar_prefetch = 0 : i64, scratch_operands = 0 : i64, tpu.core_type = #tpu.core_type<tc>, window_params = [{transform_indices = @transform_0, window_bounds = array<i64: 256, 36>}, {pipeline_mode = #tpu.pipeline_mode<synchronous>, transform_indices = @transform_1, window_bounds = array<i64: 36, 128>}, {pipeline_mode = #tpu.pipeline_mode<synchronous>, transform_indices = @transform_2, window_bounds = array<i64: 1, 128>}, {transform_indices = @transform_3, window_bounds = array<i64: 256, 128>}]} {
    %c0 = arith.constant 0 : index
    %c0_0 = arith.constant 0 : index
    %0 = vector.load %arg1[%c0, %c0_0] : memref<256x36xbf16, #tpu.memory_space<vmem>>, vector<256x36xbf16>
    %c0_1 = arith.constant 0 : index
    %c0_2 = arith.constant 0 : index
    %1 = vector.load %arg2[%c0_1, %c0_2] : memref<36x128xbf16, #tpu.memory_space<vmem>>, vector<36x128xbf16>
    %cst = arith.constant dense<0.000000e+00> : vector<256x128xf32>
    %2 = tpu.matmul %0, %1, %cst {dimension_numbers = #tpu.dot_dimension_numbers<[1], [0], [0], [1], [0, 0, 1, 1], [], []>} : vector<256x36xbf16>, vector<36x128xbf16>, vector<256x128xf32> -> vector<256x128xf32>
    %c0_3 = arith.constant 0 : index
    %c0_4 = arith.constant 0 : index
    %3 = vector.load %arg3[%c0_3, %c0_4] : memref<1x128xf32, #tpu.memory_space<vmem>>, vector<1x128xf32>
    %4 = vector.broadcast %3 : vector<1x128xf32> to vector<256x128xf32>
    %5 = arith.addf %2, %4 : vector<256x128xf32>
    %cst_5 = arith.constant 0.000000e+00 : f32
    %6 = vector.broadcast %cst_5 : f32 to vector<256x128xf32>
    %7 = arith.maximumf %5, %6 : vector<256x128xf32>
    %c0_6 = arith.constant 0 : index
    %c0_7 = arith.constant 0 : index
    %8 = vector.load %arg4[%c0_6, %c0_7] : memref<256x128xf32, #tpu.memory_space<vmem>>, vector<256x128xf32>
    tpu.vector_store %arg4[%c0_6, %c0_7], %7 {strides = array<i32>} : memref<256x128xf32, #tpu.memory_space<vmem>>, vector<256x128xf32>,
    return
  }
  func.func @transform_0(%arg0: i32) -> (i32, i32) {
    %c0_i32 = arith.constant 0 : i32
    %c0_i32_0 = arith.constant 0 : i32
    return %arg0, %c0_i32 : i32, i32
  }
  func.func @transform_1(%arg0: i32) -> (i32, i32) {
    %c0_i32 = arith.constant 0 : i32
    %c0_i32_0 = arith.constant 0 : i32
    %c0_i32_1 = arith.constant 0 : i32
    return %c0_i32, %c0_i32_0 : i32, i32
  }
  func.func @transform_2(%arg0: i32) -> (i32, i32) {
    %c0_i32 = arith.constant 0 : i32
    %c0_i32_0 = arith.constant 0 : i32
    %c0_i32_1 = arith.constant 0 : i32
    return %c0_i32, %c0_i32_0 : i32, i32
  }
  func.func @transform_3(%arg0: i32) -> (i32, i32) {
    %c0_i32 = arith.constant 0 : i32
    %c0_i32_0 = arith.constant 0 : i32
    return %arg0, %c0_i32 : i32, i32
  }
}

module attributes {stable_mosaic.version = 11 : i64} {
  func.func @_complex_mm_kernel(%arg0: i32, %arg1: memref<256x72xbf16, #tpu.memory_space<vmem>>, %arg2: memref<72x128xbf16, #tpu.memory_space<vmem>>, %arg3: memref<1x128xf32, #tpu.memory_space<vmem>>, %arg4: memref<256x128xf32, #tpu.memory_space<vmem>>) attributes {dimension_semantics = [#tpu.dimension_semantics<parallel>], iteration_bounds = array<i64: 2>, scalar_prefetch = 0 : i64, scratch_operands = 0 : i64, tpu.core_type = #tpu.core_type<tc>, window_params = [{transform_indices = @transform_0, window_bounds = array<i64: 256, 72>}, {pipeline_mode = #tpu.pipeline_mode<synchronous>, transform_indices = @transform_1, window_bounds = array<i64: 72, 128>}, {pipeline_mode = #tpu.pipeline_mode<synchronous>, transform_indices = @transform_2, window_bounds = array<i64: 1, 128>}, {transform_indices = @transform_3, window_bounds = array<i64: 256, 128>}]} {
    %c0 = arith.constant 0 : index
    %c0_0 = arith.constant 0 : index
    %0 = vector.load %arg1[%c0, %c0_0] : memref<256x72xbf16, #tpu.memory_space<vmem>>, vector<256x72xbf16>
    %c0_1 = arith.constant 0 : index
    %c0_2 = arith.constant 0 : index
    %1 = vector.load %arg2[%c0_1, %c0_2] : memref<72x128xbf16, #tpu.memory_space<vmem>>, vector<72x128xbf16>
    %cst = arith.constant dense<0.000000e+00> : vector<256x128xf32>
    %2 = tpu.matmul %0, %1, %cst {dimension_numbers = #tpu.dot_dimension_numbers<[1], [0], [0], [1], [0, 0, 1, 1], [], []>} : vector<256x72xbf16>, vector<72x128xbf16>, vector<256x128xf32> -> vector<256x128xf32>
    %c0_3 = arith.constant 0 : index
    %c0_4 = arith.constant 0 : index
    %3 = vector.load %arg3[%c0_3, %c0_4] : memref<1x128xf32, #tpu.memory_space<vmem>>, vector<1x128xf32>
    %4 = vector.broadcast %3 : vector<1x128xf32> to vector<256x128xf32>
    %5 = arith.addf %2, %4 : vector<256x128xf32>
    %cst_5 = arith.constant 0.000000e+00 : f32
    %6 = vector.broadcast %cst_5 : f32 to vector<256x128xf32>
    %7 = arith.maximumf %5, %6 : vector<256x128xf32>
    %c0_6 = arith.constant 0 : index
    %c0_7 = arith.constant 0 : index
    %8 = vector.load %arg4[%c0_6, %c0_7] : memref<256x128xf32, #tpu.memory_space<vmem>>, vector<256x128xf32>
    tpu.vector_store %arg4[%c0_6, %c0_7], %7 {strides = array<i32>} : memref<256x128xf32, #tpu.memory_space<vmem>>, vector<256x128xf32>,
    return
  }
  func.func @transform_0(%arg0: i32) -> (i32, i32) {
    %c0_i32 = arith.constant 0 : i32
    %c0_i32_0 = arith.constant 0 : i32
    return %arg0, %c0_i32 : i32, i32
  }
  func.func @transform_1(%arg0: i32) -> (i32, i32) {
    %c0_i32 = arith.constant 0 : i32
    %c0_i32_0 = arith.constant 0 : i32
    %c0_i32_1 = arith.constant 0 : i32
    return %c0_i32, %c0_i32_0 : i32, i32
  }
  func.func @transform_2(%arg0: i32) -> (i32, i32) {
    %c0_i32 = arith.constant 0 : i32
    %c0_i32_0 = arith.constant 0 : i32
    %c0_i32_1 = arith.constant 0 : i32
    return %c0_i32, %c0_i32_0 : i32, i32
  }
  func.func @transform_3(%arg0: i32) -> (i32, i32) {
    %c0_i32 = arith.constant 0 : i32
    %c0_i32_0 = arith.constant 0 : i32
    return %arg0, %c0_i32 : i32, i32
  }
}

module attributes {stable_mosaic.version = 11 : i64} {
  func.func @_complex_mm_kernel(%arg0: i32, %arg1: memref<64x72xbf16, #tpu.memory_space<vmem>>, %arg2: memref<72x128xbf16, #tpu.memory_space<vmem>>, %arg3: memref<1x128xf32, #tpu.memory_space<vmem>>, %arg4: memref<64x128xf32, #tpu.memory_space<vmem>>) attributes {dimension_semantics = [#tpu.dimension_semantics<parallel>], iteration_bounds = array<i64: 2>, scalar_prefetch = 0 : i64, scratch_operands = 0 : i64, tpu.core_type = #tpu.core_type<tc>, window_params = [{transform_indices = @transform_0, window_bounds = array<i64: 64, 72>}, {pipeline_mode = #tpu.pipeline_mode<synchronous>, transform_indices = @transform_1, window_bounds = array<i64: 72, 128>}, {pipeline_mode = #tpu.pipeline_mode<synchronous>, transform_indices = @transform_2, window_bounds = array<i64: 1, 128>}, {transform_indices = @transform_3, window_bounds = array<i64: 64, 128>}]} {
    %c0 = arith.constant 0 : index
    %c0_0 = arith.constant 0 : index
    %0 = vector.load %arg1[%c0, %c0_0] : memref<64x72xbf16, #tpu.memory_space<vmem>>, vector<64x72xbf16>
    %c0_1 = arith.constant 0 : index
    %c0_2 = arith.constant 0 : index
    %1 = vector.load %arg2[%c0_1, %c0_2] : memref<72x128xbf16, #tpu.memory_space<vmem>>, vector<72x128xbf16>
    %cst = arith.constant dense<0.000000e+00> : vector<64x128xf32>
    %2 = tpu.matmul %0, %1, %cst {dimension_numbers = #tpu.dot_dimension_numbers<[1], [0], [0], [1], [0, 0, 1, 1], [], []>} : vector<64x72xbf16>, vector<72x128xbf16>, vector<64x128xf32> -> vector<64x128xf32>
    %c0_3 = arith.constant 0 : index
    %c0_4 = arith.constant 0 : index
    %3 = vector.load %arg3[%c0_3, %c0_4] : memref<1x128xf32, #tpu.memory_space<vmem>>, vector<1x128xf32>
    %4 = vector.broadcast %3 : vector<1x128xf32> to vector<64x128xf32>
    %5 = arith.addf %2, %4 : vector<64x128xf32>
    %cst_5 = arith.constant 0.000000e+00 : f32
    %6 = vector.broadcast %cst_5 : f32 to vector<64x128xf32>
    %7 = arith.maximumf %5, %6 : vector<64x128xf32>
    %c0_6 = arith.constant 0 : index
    %c0_7 = arith.constant 0 : index
    %8 = vector.load %arg4[%c0_6, %c0_7] : memref<64x128xf32, #tpu.memory_space<vmem>>, vector<64x128xf32>
    tpu.vector_store %arg4[%c0_6, %c0_7], %7 {strides = array<i32>} : memref<64x128xf32, #tpu.memory_space<vmem>>, vector<64x128xf32>,
    return
  }
  func.func @transform_0(%arg0: i32) -> (i32, i32) {
    %c0_i32 = arith.constant 0 : i32
    %c0_i32_0 = arith.constant 0 : i32
    return %arg0, %c0_i32 : i32, i32
  }
  func.func @transform_1(%arg0: i32) -> (i32, i32) {
    %c0_i32 = arith.constant 0 : i32
    %c0_i32_0 = arith.constant 0 : i32
    %c0_i32_1 = arith.constant 0 : i32
    return %c0_i32, %c0_i32_0 : i32, i32
  }
  func.func @transform_2(%arg0: i32) -> (i32, i32) {
    %c0_i32 = arith.constant 0 : i32
    %c0_i32_0 = arith.constant 0 : i32
    %c0_i32_1 = arith.constant 0 : i32
    return %c0_i32, %c0_i32_0 : i32, i32
  }
  func.func @transform_3(%arg0: i32) -> (i32, i32) {
    %c0_i32 = arith.constant 0 : i32
    %c0_i32_0 = arith.constant 0 : i32
    return %arg0, %c0_i32 : i32, i32
  }
}

module attributes {stable_mosaic.version = 11 : i64} {
  func.func @_complex_mm_kernel(%arg0: i32, %arg1: memref<64x144xbf16, #tpu.memory_space<vmem>>, %arg2: memref<144x128xbf16, #tpu.memory_space<vmem>>, %arg3: memref<1x128xf32, #tpu.memory_space<vmem>>, %arg4: memref<64x128xf32, #tpu.memory_space<vmem>>) attributes {dimension_semantics = [#tpu.dimension_semantics<parallel>], iteration_bounds = array<i64: 2>, scalar_prefetch = 0 : i64, scratch_operands = 0 : i64, tpu.core_type = #tpu.core_type<tc>, window_params = [{transform_indices = @transform_0, window_bounds = array<i64: 64, 144>}, {pipeline_mode = #tpu.pipeline_mode<synchronous>, transform_indices = @transform_1, window_bounds = array<i64: 144, 128>}, {pipeline_mode = #tpu.pipeline_mode<synchronous>, transform_indices = @transform_2, window_bounds = array<i64: 1, 128>}, {transform_indices = @transform_3, window_bounds = array<i64: 64, 128>}]} {
    %c0 = arith.constant 0 : index
    %c0_0 = arith.constant 0 : index
    %0 = vector.load %arg1[%c0, %c0_0] : memref<64x144xbf16, #tpu.memory_space<vmem>>, vector<64x144xbf16>
    %c0_1 = arith.constant 0 : index
    %c0_2 = arith.constant 0 : index
    %1 = vector.load %arg2[%c0_1, %c0_2] : memref<144x128xbf16, #tpu.memory_space<vmem>>, vector<144x128xbf16>
    %cst = arith.constant dense<0.000000e+00> : vector<64x128xf32>
    %2 = tpu.matmul %0, %1, %cst {dimension_numbers = #tpu.dot_dimension_numbers<[1], [0], [0], [1], [0, 0, 1, 1], [], []>} : vector<64x144xbf16>, vector<144x128xbf16>, vector<64x128xf32> -> vector<64x128xf32>
    %c0_3 = arith.constant 0 : index
    %c0_4 = arith.constant 0 : index
    %3 = vector.load %arg3[%c0_3, %c0_4] : memref<1x128xf32, #tpu.memory_space<vmem>>, vector<1x128xf32>
    %4 = vector.broadcast %3 : vector<1x128xf32> to vector<64x128xf32>
    %5 = arith.addf %2, %4 : vector<64x128xf32>
    %cst_5 = arith.constant 0.000000e+00 : f32
    %6 = vector.broadcast %cst_5 : f32 to vector<64x128xf32>
    %7 = arith.maximumf %5, %6 : vector<64x128xf32>
    %c0_6 = arith.constant 0 : index
    %c0_7 = arith.constant 0 : index
    %8 = vector.load %arg4[%c0_6, %c0_7] : memref<64x128xf32, #tpu.memory_space<vmem>>, vector<64x128xf32>
    tpu.vector_store %arg4[%c0_6, %c0_7], %7 {strides = array<i32>} : memref<64x128xf32, #tpu.memory_space<vmem>>, vector<64x128xf32>,
    return
  }
  func.func @transform_0(%arg0: i32) -> (i32, i32) {
    %c0_i32 = arith.constant 0 : i32
    %c0_i32_0 = arith.constant 0 : i32
    return %arg0, %c0_i32 : i32, i32
  }
  func.func @transform_1(%arg0: i32) -> (i32, i32) {
    %c0_i32 = arith.constant 0 : i32
    %c0_i32_0 = arith.constant 0 : i32
    %c0_i32_1 = arith.constant 0 : i32
    return %c0_i32, %c0_i32_0 : i32, i32
  }
  func.func @transform_2(%arg0: i32) -> (i32, i32) {
    %c0_i32 = arith.constant 0 : i32
    %c0_i32_0 = arith.constant 0 : i32
    %c0_i32_1 = arith.constant 0 : i32
    return %c0_i32, %c0_i32_0 : i32, i32
  }
  func.func @transform_3(%arg0: i32) -> (i32, i32) {
    %c0_i32 = arith.constant 0 : i32
    %c0_i32_0 = arith.constant 0 : i32
    return %arg0, %c0_i32 : i32, i32
  }
}

module attributes {stable_mosaic.version = 11 : i64} {
  func.func @_complex_mm_kernel(%arg0: i32, %arg1: memref<16x144xbf16, #tpu.memory_space<vmem>>, %arg2: memref<144x128xbf16, #tpu.memory_space<vmem>>, %arg3: memref<1x128xf32, #tpu.memory_space<vmem>>, %arg4: memref<16x128xf32, #tpu.memory_space<vmem>>) attributes {dimension_semantics = [#tpu.dimension_semantics<parallel>], iteration_bounds = array<i64: 2>, scalar_prefetch = 0 : i64, scratch_operands = 0 : i64, tpu.core_type = #tpu.core_type<tc>, window_params = [{transform_indices = @transform_0, window_bounds = array<i64: 16, 144>}, {pipeline_mode = #tpu.pipeline_mode<synchronous>, transform_indices = @transform_1, window_bounds = array<i64: 144, 128>}, {pipeline_mode = #tpu.pipeline_mode<synchronous>, transform_indices = @transform_2, window_bounds = array<i64: 1, 128>}, {transform_indices = @transform_3, window_bounds = array<i64: 16, 128>}]} {
    %c0 = arith.constant 0 : index
    %c0_0 = arith.constant 0 : index
    %0 = vector.load %arg1[%c0, %c0_0] : memref<16x144xbf16, #tpu.memory_space<vmem>>, vector<16x144xbf16>
    %c0_1 = arith.constant 0 : index
    %c0_2 = arith.constant 0 : index
    %1 = vector.load %arg2[%c0_1, %c0_2] : memref<144x128xbf16, #tpu.memory_space<vmem>>, vector<144x128xbf16>
    %cst = arith.constant dense<0.000000e+00> : vector<16x128xf32>
    %2 = tpu.matmul %0, %1, %cst {dimension_numbers = #tpu.dot_dimension_numbers<[1], [0], [0], [1], [0, 0, 1, 1], [], []>} : vector<16x144xbf16>, vector<144x128xbf16>, vector<16x128xf32> -> vector<16x128xf32>
    %c0_3 = arith.constant 0 : index
    %c0_4 = arith.constant 0 : index
    %3 = vector.load %arg3[%c0_3, %c0_4] : memref<1x128xf32, #tpu.memory_space<vmem>>, vector<1x128xf32>
    %4 = vector.broadcast %3 : vector<1x128xf32> to vector<16x128xf32>
    %5 = arith.addf %2, %4 : vector<16x128xf32>
    %cst_5 = arith.constant 0.000000e+00 : f32
    %6 = vector.broadcast %cst_5 : f32 to vector<16x128xf32>
    %7 = arith.maximumf %5, %6 : vector<16x128xf32>
    %c0_6 = arith.constant 0 : index
    %c0_7 = arith.constant 0 : index
    %8 = vector.load %arg4[%c0_6, %c0_7] : memref<16x128xf32, #tpu.memory_space<vmem>>, vector<16x128xf32>
    tpu.vector_store %arg4[%c0_6, %c0_7], %7 {strides = array<i32>} : memref<16x128xf32, #tpu.memory_space<vmem>>, vector<16x128xf32>,
    return
  }
  func.func @transform_0(%arg0: i32) -> (i32, i32) {
    %c0_i32 = arith.constant 0 : i32
    %c0_i32_0 = arith.constant 0 : i32
    return %arg0, %c0_i32 : i32, i32
  }
  func.func @transform_1(%arg0: i32) -> (i32, i32) {
    %c0_i32 = arith.constant 0 : i32
    %c0_i32_0 = arith.constant 0 : i32
    %c0_i32_1 = arith.constant 0 : i32
    return %c0_i32, %c0_i32_0 : i32, i32
  }
  func.func @transform_2(%arg0: i32) -> (i32, i32) {
    %c0_i32 = arith.constant 0 : i32
    %c0_i32_0 = arith.constant 0 : i32
    %c0_i32_1 = arith.constant 0 : i32
    return %c0_i32, %c0_i32_0 : i32, i32
  }
  func.func @transform_3(%arg0: i32) -> (i32, i32) {
    %c0_i32 = arith.constant 0 : i32
    %c0_i32_0 = arith.constant 0 : i32
    return %arg0, %c0_i32 : i32, i32
  }
}

module attributes {stable_mosaic.version = 11 : i64} {
  func.func @_complex_mm_kernel(%arg0: i32, %arg1: memref<64x288xbf16, #tpu.memory_space<vmem>>, %arg2: memref<288x128xbf16, #tpu.memory_space<vmem>>, %arg3: memref<1x128xf32, #tpu.memory_space<vmem>>, %arg4: memref<64x128xf32, #tpu.memory_space<vmem>>) attributes {dimension_semantics = [#tpu.dimension_semantics<parallel>], iteration_bounds = array<i64: 2>, scalar_prefetch = 0 : i64, scratch_operands = 0 : i64, tpu.core_type = #tpu.core_type<tc>, window_params = [{transform_indices = @transform_0, window_bounds = array<i64: 64, 288>}, {pipeline_mode = #tpu.pipeline_mode<synchronous>, transform_indices = @transform_1, window_bounds = array<i64: 288, 128>}, {pipeline_mode = #tpu.pipeline_mode<synchronous>, transform_indices = @transform_2, window_bounds = array<i64: 1, 128>}, {transform_indices = @transform_3, window_bounds = array<i64: 64, 128>}]} {
    %c0 = arith.constant 0 : index
    %c0_0 = arith.constant 0 : index
    %0 = vector.load %arg1[%c0, %c0_0] : memref<64x288xbf16, #tpu.memory_space<vmem>>, vector<64x288xbf16>
    %c0_1 = arith.constant 0 : index
    %c0_2 = arith.constant 0 : index
    %1 = vector.load %arg2[%c0_1, %c0_2] : memref<288x128xbf16, #tpu.memory_space<vmem>>, vector<288x128xbf16>
    %cst = arith.constant dense<0.000000e+00> : vector<64x128xf32>
    %2 = tpu.matmul %0, %1, %cst {dimension_numbers = #tpu.dot_dimension_numbers<[1], [0], [0], [1], [0, 0, 1, 1], [], []>} : vector<64x288xbf16>, vector<288x128xbf16>, vector<64x128xf32> -> vector<64x128xf32>
    %c0_3 = arith.constant 0 : index
    %c0_4 = arith.constant 0 : index
    %3 = vector.load %arg3[%c0_3, %c0_4] : memref<1x128xf32, #tpu.memory_space<vmem>>, vector<1x128xf32>
    %4 = vector.broadcast %3 : vector<1x128xf32> to vector<64x128xf32>
    %5 = arith.addf %2, %4 : vector<64x128xf32>
    %cst_5 = arith.constant 0.000000e+00 : f32
    %6 = vector.broadcast %cst_5 : f32 to vector<64x128xf32>
    %7 = arith.maximumf %5, %6 : vector<64x128xf32>
    %c0_6 = arith.constant 0 : index
    %c0_7 = arith.constant 0 : index
    %8 = vector.load %arg4[%c0_6, %c0_7] : memref<64x128xf32, #tpu.memory_space<vmem>>, vector<64x128xf32>
    tpu.vector_store %arg4[%c0_6, %c0_7], %7 {strides = array<i32>} : memref<64x128xf32, #tpu.memory_space<vmem>>, vector<64x128xf32>,
    return
  }
  func.func @transform_0(%arg0: i32) -> (i32, i32) {
    %c0_i32 = arith.constant 0 : i32
    %c0_i32_0 = arith.constant 0 : i32
    return %arg0, %c0_i32 : i32, i32
  }
  func.func @transform_1(%arg0: i32) -> (i32, i32) {
    %c0_i32 = arith.constant 0 : i32
    %c0_i32_0 = arith.constant 0 : i32
    %c0_i32_1 = arith.constant 0 : i32
    return %c0_i32, %c0_i32_0 : i32, i32
  }
  func.func @transform_2(%arg0: i32) -> (i32, i32) {
    %c0_i32 = arith.constant 0 : i32
    %c0_i32_0 = arith.constant 0 : i32
    %c0_i32_1 = arith.constant 0 : i32
    return %c0_i32, %c0_i32_0 : i32, i32
  }
  func.func @transform_3(%arg0: i32) -> (i32, i32) {
    %c0_i32 = arith.constant 0 : i32
    %c0_i32_0 = arith.constant 0 : i32
    return %arg0, %c0_i32 : i32, i32
  }
}

module attributes {stable_mosaic.version = 11 : i64} {
  func.func @_complex_mm_kernel(%arg0: i32, %arg1: memref<256x144xbf16, #tpu.memory_space<vmem>>, %arg2: memref<144x128xbf16, #tpu.memory_space<vmem>>, %arg3: memref<1x128xf32, #tpu.memory_space<vmem>>, %arg4: memref<256x128xf32, #tpu.memory_space<vmem>>) attributes {dimension_semantics = [#tpu.dimension_semantics<parallel>], iteration_bounds = array<i64: 2>, scalar_prefetch = 0 : i64, scratch_operands = 0 : i64, tpu.core_type = #tpu.core_type<tc>, window_params = [{transform_indices = @transform_0, window_bounds = array<i64: 256, 144>}, {pipeline_mode = #tpu.pipeline_mode<synchronous>, transform_indices = @transform_1, window_bounds = array<i64: 144, 128>}, {pipeline_mode = #tpu.pipeline_mode<synchronous>, transform_indices = @transform_2, window_bounds = array<i64: 1, 128>}, {transform_indices = @transform_3, window_bounds = array<i64: 256, 128>}]} {
    %c0 = arith.constant 0 : index
    %c0_0 = arith.constant 0 : index
    %0 = vector.load %arg1[%c0, %c0_0] : memref<256x144xbf16, #tpu.memory_space<vmem>>, vector<256x144xbf16>
    %c0_1 = arith.constant 0 : index
    %c0_2 = arith.constant 0 : index
    %1 = vector.load %arg2[%c0_1, %c0_2] : memref<144x128xbf16, #tpu.memory_space<vmem>>, vector<144x128xbf16>
    %cst = arith.constant dense<0.000000e+00> : vector<256x128xf32>
    %2 = tpu.matmul %0, %1, %cst {dimension_numbers = #tpu.dot_dimension_numbers<[1], [0], [0], [1], [0, 0, 1, 1], [], []>} : vector<256x144xbf16>, vector<144x128xbf16>, vector<256x128xf32> -> vector<256x128xf32>
    %c0_3 = arith.constant 0 : index
    %c0_4 = arith.constant 0 : index
    %3 = vector.load %arg3[%c0_3, %c0_4] : memref<1x128xf32, #tpu.memory_space<vmem>>, vector<1x128xf32>
    %4 = vector.broadcast %3 : vector<1x128xf32> to vector<256x128xf32>
    %5 = arith.addf %2, %4 : vector<256x128xf32>
    %cst_5 = arith.constant 0.000000e+00 : f32
    %6 = vector.broadcast %cst_5 : f32 to vector<256x128xf32>
    %7 = arith.maximumf %5, %6 : vector<256x128xf32>
    %c0_6 = arith.constant 0 : index
    %c0_7 = arith.constant 0 : index
    %8 = vector.load %arg4[%c0_6, %c0_7] : memref<256x128xf32, #tpu.memory_space<vmem>>, vector<256x128xf32>
    tpu.vector_store %arg4[%c0_6, %c0_7], %7 {strides = array<i32>} : memref<256x128xf32, #tpu.memory_space<vmem>>, vector<256x128xf32>,
    return
  }
  func.func @transform_0(%arg0: i32) -> (i32, i32) {
    %c0_i32 = arith.constant 0 : i32
    %c0_i32_0 = arith.constant 0 : i32
    return %arg0, %c0_i32 : i32, i32
  }
  func.func @transform_1(%arg0: i32) -> (i32, i32) {
    %c0_i32 = arith.constant 0 : i32
    %c0_i32_0 = arith.constant 0 : i32
    %c0_i32_1 = arith.constant 0 : i32
    return %c0_i32, %c0_i32_0 : i32, i32
  }
  func.func @transform_2(%arg0: i32) -> (i32, i32) {
    %c0_i32 = arith.constant 0 : i32
    %c0_i32_0 = arith.constant 0 : i32
    %c0_i32_1 = arith.constant 0 : i32
    return %c0_i32, %c0_i32_0 : i32, i32
  }
  func.func @transform_3(%arg0: i32) -> (i32, i32) {
    %c0_i32 = arith.constant 0 : i32
    %c0_i32_0 = arith.constant 0 : i32
    return %arg0, %c0_i32 : i32, i32
  }
}

module attributes {stable_mosaic.version = 11 : i64} {
  func.func @_complex_mm_kernel(%arg0: i32, %arg1: memref<256x8xbf16, #tpu.memory_space<vmem>>, %arg2: memref<8x128xbf16, #tpu.memory_space<vmem>>, %arg3: memref<1x128xf32, #tpu.memory_space<vmem>>, %arg4: memref<256x128xf32, #tpu.memory_space<vmem>>) attributes {dimension_semantics = [#tpu.dimension_semantics<parallel>], iteration_bounds = array<i64: 2>, scalar_prefetch = 0 : i64, scratch_operands = 0 : i64, tpu.core_type = #tpu.core_type<tc>, window_params = [{transform_indices = @transform_0, window_bounds = array<i64: 256, 8>}, {pipeline_mode = #tpu.pipeline_mode<synchronous>, transform_indices = @transform_1, window_bounds = array<i64: 8, 128>}, {pipeline_mode = #tpu.pipeline_mode<synchronous>, transform_indices = @transform_2, window_bounds = array<i64: 1, 128>}, {transform_indices = @transform_3, window_bounds = array<i64: 256, 128>}]} {
    %c0 = arith.constant 0 : index
    %c0_0 = arith.constant 0 : index
    %0 = vector.load %arg1[%c0, %c0_0] : memref<256x8xbf16, #tpu.memory_space<vmem>>, vector<256x8xbf16>
    %c0_1 = arith.constant 0 : index
    %c0_2 = arith.constant 0 : index
    %1 = vector.load %arg2[%c0_1, %c0_2] : memref<8x128xbf16, #tpu.memory_space<vmem>>, vector<8x128xbf16>
    %cst = arith.constant dense<0.000000e+00> : vector<256x128xf32>
    %2 = tpu.matmul %0, %1, %cst {dimension_numbers = #tpu.dot_dimension_numbers<[1], [0], [0], [1], [0, 0, 1, 1], [], []>} : vector<256x8xbf16>, vector<8x128xbf16>, vector<256x128xf32> -> vector<256x128xf32>
    %c0_3 = arith.constant 0 : index
    %c0_4 = arith.constant 0 : index
    %3 = vector.load %arg3[%c0_3, %c0_4] : memref<1x128xf32, #tpu.memory_space<vmem>>, vector<1x128xf32>
    %4 = vector.broadcast %3 : vector<1x128xf32> to vector<256x128xf32>
    %5 = arith.addf %2, %4 : vector<256x128xf32>
    %c0_5 = arith.constant 0 : index
    %c0_6 = arith.constant 0 : index
    %6 = vector.load %arg4[%c0_5, %c0_6] : memref<256x128xf32, #tpu.memory_space<vmem>>, vector<256x128xf32>
    tpu.vector_store %arg4[%c0_5, %c0_6], %5 {strides = array<i32>} : memref<256x128xf32, #tpu.memory_space<vmem>>, vector<256x128xf32>,
    return
  }
  func.func @transform_0(%arg0: i32) -> (i32, i32) {
    %c0_i32 = arith.constant 0 : i32
    %c0_i32_0 = arith.constant 0 : i32
    return %arg0, %c0_i32 : i32, i32
  }
  func.func @transform_1(%arg0: i32) -> (i32, i32) {
    %c0_i32 = arith.constant 0 : i32
    %c0_i32_0 = arith.constant 0 : i32
    %c0_i32_1 = arith.constant 0 : i32
    return %c0_i32, %c0_i32_0 : i32, i32
  }
  func.func @transform_2(%arg0: i32) -> (i32, i32) {
    %c0_i32 = arith.constant 0 : i32
    %c0_i32_0 = arith.constant 0 : i32
    %c0_i32_1 = arith.constant 0 : i32
    return %c0_i32, %c0_i32_0 : i32, i32
  }
  func.func @transform_3(%arg0: i32) -> (i32, i32) {
    %c0_i32 = arith.constant 0 : i32
    %c0_i32_0 = arith.constant 0 : i32
    return %arg0, %c0_i32 : i32, i32
  }
}

</mosaic_0001>

<bundles_post_ra>
// kernel: complex_unet_forward.13
= control target key start
LH: loop header
LB: loop body
LE: loop exit
PB: predicated region body
PF: predicated region fallthrough
CT: control target
= control target key end

     0   :  { %s815_s12 = smov 0   ;;  %s950_s0 = inlined_call_operand.vmem [shape: bf16[512,36], index: 0, kind: input, shape index: {}]   ;;  %s951_s1 = inlined_call_operand.vmem [shape: bf16[36,128], index: 1, kind: input, shape index: {}]   ;;  %s952_s2 = inlined_call_operand.vmem [shape: f32[1,128], index: 2, kind: input, shape index: {}]   ;;  %s953_s3 = inlined_call_operand.vmem [shape: f32[512,128], index: 3, kind: output, shape index: {}]  }
   0x1 LB: > { %s648_s13 = sadd.s32 4294967295, %s793_s12   ;;  %p652_p0 = scmp.ge.s32.totalorder %s793_s12, 1  ;;  %s793_s12 = sphi %s815_s12, %s13_s12  }
   0x2   : > { %p138_p1 = scmp.lt.s32.totalorder %s793_s12, 3 }
   0x4   : > { %p139_p2 = pnand %p652_p0, %p138_p1 }
   0x5   : > { %v768_v0 = vld [vmem:[%s951_s1] sm:$0xff] (!%p139_p2)   ;;  %v769_v1 = vld [vmem:[%s951_s1 + $0x8] sm:$0xff] (!%p139_p2)   ;;  %s653_s18 = sshll.u32 (!%p139_p2), %s648_s13, 5  ;;  %v770_v2 = vld [vmem:[%s951_s1 + $0x10] ss:$0 sps:$4 sm:$0x33] (!%p139_p2)  }
   0x6   : > { %142 = sbr.rel (%p139_p2) target bundleno = 263 (0x107), region = 32  ;;  %714 = vmatprep.subr.bf16.mxu0 (!%p139_p2), %v768_v0  ;;  %752 = vmatprep.subr.bf16.mxu1 (!%p139_p2), %v768_v0  ;;  %p163_p3 = scmp.lt.s32.totalorder (!%p139_p2), %s653_s18, 63  ;;  %vm363_vm0 = vcmask (!%p139_p2), 1041408   ;;  %vm314_vm1 = vcmask (!%p139_p2), 293888   ;;  %v875_v20 = vld [vmem:[%s952_s2] ss:$0 sm:$0xff] (!%p139_p2) }
   0x7   : > { %715 = vmatpush3.bf16.msra.mxu0 (!%p139_p2), %v768_v0  ;;  %755 = vmatpush3.bf16.msra.mxu1 (!%p139_p2), %v768_v0  ;;  %v365_v3 = vsel (!%p139_p2), %vm363_vm0, %v770_v2, 0 }
   0x8   : > { %716 = vmatprep.subr.bf16.mxu0 (!%p139_p2), %v769_v1  ;;  %753 = vmatprep.subr.bf16.mxu1 (!%p139_p2), %v769_v1 }
   0xb   : > { %717 = vmatpush3.bf16.msra.mxu0 (!%p139_p2), %v769_v1  ;;  %756 = vmatpush3.bf16.msra.mxu1 (!%p139_p2), %v769_v1 }
   0xc   : > { %758 = vmatprep.subr.msk.bf16.mxu0 (!%p139_p2), %vm363_vm0, %v770_v2  ;;  %759 = vmatprep.subr.msk.bf16.mxu1 (!%p139_p2), %vm363_vm0, %v770_v2 }
   0xd   : > { %s955_s18 = smov (!%p163_p3, %s653_s18), 63 }
   0xe   : > { %s654_s21 = sshll.u32 %s955_s18, 2  ;;  %s656_s27 = sshll.u32 %s955_s18, 3 }
   0xf   : > { %s838_s24 = scalar_lea.vmem %s950_s0, %s654_s21  ;;  %719 = vmatpush3.bf16.msra.mxu0 %v365_v3  ;;  %757 = vmatpush3.bf16.msra.mxu1 %v365_v3  ;;  %s883_s30 = scalar_lea.vmem %s953_s3, %s656_s27 }
  0x10   : > { %v771_v4 = vld [vmem:[%s838_s24] sm:$0xff]   ;;  %v773_v6 = vld [vmem:[%s838_s24 + $0x8] sm:$0xff]   ;;  %v775_v8 = vld [vmem:[%s838_s24 + $0x10] sm:$0xff]  }
  0x11   : > { %v772_v5 = vld [vmem:[%s838_s24 + $0x40] sm:$0xff]   ;;  %720 = vmatprep.mubr.msk.bf16.mxu0 %vm314_vm1, %v771_v4  ;;  %v774_v7 = vld [vmem:[%s838_s24 + $0x48] sm:$0xff]   ;;  %v776_v9 = vld [vmem:[%s838_s24 + $0x50] sm:$0xff]  }
  0x12   : > { %736 = vmatprep.mubr.msk.bf16.mxu1 %vm314_vm1, %v772_v5  ;;  %721 = vmatmul.mubr.msk.bf16.vlgmr.msra.gmra.mrb[0].mxu0 %vm314_vm1, %v773_v6  ;;  %v777_v10 = vld [vmem:[%s838_s24 + $0x18] sm:$0xff]   ;;  %v779_v12 = vld [vmem:[%s838_s24 + $0x20] sm:$0xff]   ;;  %v781_v14 = vld [vmem:[%s838_s24 + $0x28] sm:$0xff]  }
  0x13   : > { %737 = vmatmul.mubr.msk.bf16.vlgmr.msra.gmra.mrb[0].mxu1 %vm314_vm1, %v774_v7  ;;  %724 = vmatprep.mubr.msk.bf16.mxu0 %vm314_vm1, %v775_v8  ;;  %v778_v11 = vld [vmem:[%s838_s24 + $0x58] sm:$0xff]   ;;  %v780_v13 = vld [vmem:[%s838_s24 + $0x60] sm:$0xff]   ;;  %v782_v15 = vld [vmem:[%s838_s24 + $0x68] sm:$0xff]  }
  0x14   : > { %740 = vmatprep.mubr.msk.bf16.mxu1 %vm314_vm1, %v776_v9  ;;  %v783_v16 = vld [vmem:[%s838_s24 + $0x30] sm:$0xff]   ;;  %v785_v18 = vld [vmem:[%s838_s24 + $0x38] sm:$0xff]  }
  0x15   : > { %v784_v17 = vld [vmem:[%s838_s24 + $0x70] sm:$0xff]   ;;  %v786_v19 = vld [vmem:[%s838_s24 + $0x78] sm:$0xff]  }
  0x1a   : > { %725 = vmatmul.mubr.msk.bf16.gmra.mrb[4].mxu0 %vm314_vm1, %v777_v10 }
  0x1b   : > { %741 = vmatmul.mubr.msk.bf16.gmra.mrb[4].mxu1 %vm314_vm1, %v778_v11  ;;  %728 = vmatprep.mubr.msk.bf16.mxu0 %vm314_vm1, %v779_v12 }
  0x1c   : > { %744 = vmatprep.mubr.msk.bf16.mxu1 %vm314_vm1, %v780_v13 }
  0x22   : > { %729 = vmatmul.mubr.msk.bf16.gmra.mrb[8].mxu0 %vm314_vm1, %v781_v14 }
  0x23   : > { %745 = vmatmul.mubr.msk.bf16.gmra.mrb[8].mxu1 %vm314_vm1, %v782_v15  ;;  %732 = vmatprep.mubr.msk.bf16.mxu0 %vm314_vm1, %v783_v16 }
  0x24   : > { %748 = vmatprep.mubr.msk.bf16.mxu1 %vm314_vm1, %v784_v17 }
  0x2a   : > { %733 = vmatmul.mubr.msk.bf16.gmra.mrb[12].mxu0 %vm314_vm1, %v785_v18 }
  0x2b   : > { %749 = vmatmul.mubr.msk.bf16.gmra.mrb[12].mxu1 %vm314_vm1, %v786_v19 }
  0xe5   : > { %v722_v21 = vpop.f32.mrb[0].mxu0 }
  0xe6   : > { %v738_v22 = vpop.f32.mrb[0].mxu1  ;;  %v410_v23 = vadd.f32 %v722_v21, %v875_v20  ;;  %v401_v25 = vpop.f32.mrb[1].mxu0 }
  0xe7   : > { %v474_v24 = vadd.f32 %v738_v22, %v875_v20  ;;  %v465_v26 = vpop.f32.mrb[1].mxu1  ;;  %v402_v27 = vadd.f32 %v875_v20, %v401_v25  ;;  %v723_v29 = vpop.f32.mrb[2].mxu0 }
  0xe8   : > { %v466_v28 = vadd.f32 %v875_v20, %v465_v26  ;;  %v739_v30 = vpop.f32.mrb[2].mxu1  ;;  %v530_v31 = vmax.f32 %v410_v23, 0.0  ;;  %v413_v33 = vadd.f32 %v723_v29, %v875_v20  ;;  %v404_v35 = vpop.f32.mrb[3].mxu0 }
  0xe9   : > { %v546_v32 = vmax.f32 %v474_v24, 0.0  ;;  %v477_v34 = vadd.f32 %v739_v30, %v875_v20  ;;  %v468_v36 = vpop.f32.mrb[3].mxu1  ;;  %v528_v37 = vmax.f32 %v402_v27, 0.0  ;;  %v405_v39 = vadd.f32 %v875_v20, %v404_v35 }
  0xea   : > { %v544_v38 = vmax.f32 %v466_v28, 0.0  ;;  %v469_v40 = vadd.f32 %v875_v20, %v468_v36  ;;  %562 = vst [vmem:[%s883_s30 + $0x10] sm:$0xff] %v530_v31  ;;  %v531_v41 = vmax.f32 %v413_v33, 0.0 }
  0xeb   : > { %578 = vst [vmem:[%s883_s30 + $0x90] sm:$0xff] %v546_v32  ;;  %v547_v42 = vmax.f32 %v477_v34, 0.0  ;;  %560 = vst [vmem:[%s883_s30] sm:$0xff] %v528_v37  ;;  %v529_v43 = vmax.f32 %v405_v39, 0.0 }
  0xec   : > { %576 = vst [vmem:[%s883_s30 + $0x80] sm:$0xff] %v544_v38  ;;  %v545_v44 = vmax.f32 %v469_v40, 0.0  ;;  %563 = vst [vmem:[%s883_s30 + $0x18] sm:$0xff] %v531_v41 }
  0xed   : > { %579 = vst [vmem:[%s883_s30 + $0x98] sm:$0xff] %v547_v42  ;;  %561 = vst [vmem:[%s883_s30 + $0x8] sm:$0xff] %v529_v43  ;;  %v726_v45 = vpop.f32.mrb[4].mxu0 }
  0xee   : > { %577 = vst [vmem:[%s883_s30 + $0x88] sm:$0xff] %v545_v44  ;;  %v742_v46 = vpop.f32.mrb[4].mxu1  ;;  %v426_v47 = vadd.f32 %v726_v45, %v875_v20  ;;  %v417_v49 = vpop.f32.mrb[5].mxu0 }
  0xef   : > { %v490_v48 = vadd.f32 %v742_v46, %v875_v20  ;;  %v481_v50 = vpop.f32.mrb[5].mxu1  ;;  %v418_v51 = vadd.f32 %v875_v20, %v417_v49  ;;  %v727_v53 = vpop.f32.mrb[6].mxu0 }
  0xf0   : > { %v482_v52 = vadd.f32 %v875_v20, %v481_v50  ;;  %v743_v54 = vpop.f32.mrb[6].mxu1  ;;  %v534_v55 = vmax.f32 %v426_v47, 0.0  ;;  %v429_v57 = vadd.f32 %v727_v53, %v875_v20  ;;  %v420_v59 = vpop.f32.mrb[7].mxu0 }
  0xf1   : > { %v550_v56 = vmax.f32 %v490_v48, 0.0  ;;  %v493_v58 = vadd.f32 %v743_v54, %v875_v20  ;;  %v484_v60 = vpop.f32.mrb[7].mxu1  ;;  %v532_v61 = vmax.f32 %v418_v51, 0.0  ;;  %v421_v63 = vadd.f32 %v875_v20, %v420_v59 }
  0xf2   : > { %v548_v62 = vmax.f32 %v482_v52, 0.0  ;;  %v485_v0 = vadd.f32 %v875_v20, %v484_v60  ;;  %566 = vst [vmem:[%s883_s30 + $0x30] sm:$0xff] %v534_v55  ;;  %v535_v1 = vmax.f32 %v429_v57, 0.0 }
  0xf3   : > { %582 = vst [vmem:[%s883_s30 + $0xb0] sm:$0xff] %v550_v56  ;;  %v551_v2 = vmax.f32 %v493_v58, 0.0  ;;  %564 = vst [vmem:[%s883_s30 + $0x20] sm:$0xff] %v532_v61  ;;  %v533_v3 = vmax.f32 %v421_v63, 0.0 }
  0xf4   : > { %580 = vst [vmem:[%s883_s30 + $0xa0] sm:$0xff] %v548_v62  ;;  %v549_v4 = vmax.f32 %v485_v0, 0.0  ;;  %567 = vst [vmem:[%s883_s30 + $0x38] sm:$0xff] %v535_v1 }
  0xf5   : > { %583 = vst [vmem:[%s883_s30 + $0xb8] sm:$0xff] %v551_v2  ;;  %565 = vst [vmem:[%s883_s30 + $0x28] sm:$0xff] %v533_v3  ;;  %v730_v5 = vpop.f32.mrb[8].mxu0 }
  0xf6   : > { %581 = vst [vmem:[%s883_s30 + $0xa8] sm:$0xff] %v549_v4  ;;  %v746_v6 = vpop.f32.mrb[8].mxu1  ;;  %v442_v7 = vadd.f32 %v730_v5, %v875_v20  ;;  %v433_v9 = vpop.f32.mrb[9].mxu0 }
  0xf7   : > { %v506_v8 = vadd.f32 %v746_v6, %v875_v20  ;;  %v497_v10 = vpop.f32.mrb[9].mxu1  ;;  %v434_v11 = vadd.f32 %v875_v20, %v433_v9  ;;  %v731_v13 = vpop.f32.mrb[10].mxu0 }
  0xf8   : > { %v498_v12 = vadd.f32 %v875_v20, %v497_v10  ;;  %v747_v14 = vpop.f32.mrb[10].mxu1  ;;  %v538_v15 = vmax.f32 %v442_v7, 0.0  ;;  %v445_v17 = vadd.f32 %v731_v13, %v875_v20  ;;  %v436_v19 = vpop.f32.mrb[11].mxu0 }
  0xf9   : > { %v554_v16 = vmax.f32 %v506_v8, 0.0  ;;  %v509_v18 = vadd.f32 %v747_v14, %v875_v20  ;;  %v500_v21 = vpop.f32.mrb[11].mxu1  ;;  %v536_v22 = vmax.f32 %v434_v11, 0.0  ;;  %v437_v24 = vadd.f32 %v875_v20, %v436_v19 }
  0xfa   : > { %v552_v23 = vmax.f32 %v498_v12, 0.0  ;;  %v501_v25 = vadd.f32 %v875_v20, %v500_v21  ;;  %570 = vst [vmem:[%s883_s30 + $0x50] sm:$0xff] %v538_v15  ;;  %v539_v26 = vmax.f32 %v445_v17, 0.0 }
  0xfb   : > { %586 = vst [vmem:[%s883_s30 + $0xd0] sm:$0xff] %v554_v16  ;;  %v555_v27 = vmax.f32 %v509_v18, 0.0  ;;  %568 = vst [vmem:[%s883_s30 + $0x40] sm:$0xff] %v536_v22  ;;  %v537_v28 = vmax.f32 %v437_v24, 0.0 }
  0xfc   : > { %584 = vst [vmem:[%s883_s30 + $0xc0] sm:$0xff] %v552_v23  ;;  %v553_v29 = vmax.f32 %v501_v25, 0.0  ;;  %571 = vst [vmem:[%s883_s30 + $0x58] sm:$0xff] %v539_v26 }
  0xfd   : > { %587 = vst [vmem:[%s883_s30 + $0xd8] sm:$0xff] %v555_v27  ;;  %569 = vst [vmem:[%s883_s30 + $0x48] sm:$0xff] %v537_v28  ;;  %v734_v30 = vpop.f32.mrb[12].mxu0 }
  0xfe   : > { %585 = vst [vmem:[%s883_s30 + $0xc8] sm:$0xff] %v553_v29  ;;  %v750_v31 = vpop.f32.mrb[12].mxu1  ;;  %v458_v32 = vadd.f32 %v734_v30, %v875_v20  ;;  %v449_v34 = vpop.f32.mrb[13].mxu0 }
  0xff   : > { %v522_v33 = vadd.f32 %v750_v31, %v875_v20  ;;  %v513_v35 = vpop.f32.mrb[13].mxu1  ;;  %v450_v36 = vadd.f32 %v875_v20, %v449_v34  ;;  %v735_v38 = vpop.f32.mrb[14].mxu0 }
 0x100   : > { %v514_v37 = vadd.f32 %v875_v20, %v513_v35  ;;  %v751_v39 = vpop.f32.mrb[14].mxu1  ;;  %v542_v40 = vmax.f32 %v458_v32, 0.0  ;;  %v461_v42 = vadd.f32 %v735_v38, %v875_v20  ;;  %v452_v44 = vpop.f32.mrb[15].mxu0 }
 0x101   : > { %v558_v41 = vmax.f32 %v522_v33, 0.0  ;;  %v525_v43 = vadd.f32 %v751_v39, %v875_v20  ;;  %v516_v45 = vpop.f32.mrb[15].mxu1  ;;  %v540_v46 = vmax.f32 %v450_v36, 0.0  ;;  %v453_v48 = vadd.f32 %v875_v20, %v452_v44 }
 0x102   : > { %v556_v47 = vmax.f32 %v514_v37, 0.0  ;;  %v517_v49 = vadd.f32 %v875_v20, %v516_v45  ;;  %574 = vst [vmem:[%s883_s30 + $0x70] sm:$0xff] %v542_v40  ;;  %v543_v50 = vmax.f32 %v461_v42, 0.0 }
 0x103   : > { %590 = vst [vmem:[%s883_s30 + $0xf0] sm:$0xff] %v558_v41  ;;  %v559_v51 = vmax.f32 %v525_v43, 0.0  ;;  %572 = vst [vmem:[%s883_s30 + $0x60] sm:$0xff] %v540_v46  ;;  %v541_v52 = vmax.f32 %v453_v48, 0.0 }
 0x104   : > { %588 = vst [vmem:[%s883_s30 + $0xe0] sm:$0xff] %v556_v47  ;;  %v557_v53 = vmax.f32 %v517_v49, 0.0  ;;  %575 = vst [vmem:[%s883_s30 + $0x78] sm:$0xff] %v543_v50 }
 0x105   : > { %591 = vst [vmem:[%s883_s30 + $0xf8] sm:$0xff] %v559_v51  ;;  %573 = vst [vmem:[%s883_s30 + $0x68] sm:$0xff] %v541_v52 }
 0x106   : > { %589 = vst [vmem:[%s883_s30 + $0xe8] sm:$0xff] %v557_v53 }
 0x107 PF: > { %s13_s12 = sadd.s32 1, %s793_s12  }
 0x108   : > { %p10_p4 = scmp.ge.s32.totalorder %s13_s12, 4  }
 0x10a   :  { %12 = sbr.rel (!%p10_p4) target bundleno = 1 (0x1), region = 62 }

// kernel: complex_unet_forward.14
= control target key start
LH: loop header
LB: loop body
LE: loop exit
PB: predicated region body
PF: predicated region fallthrough
CT: control target
= control target key end

     0   :  { %s845_s12 = smov 0   ;;  %s986_s0 = inlined_call_operand.vmem [shape: bf16[512,72], index: 0, kind: input, shape index: {}]   ;;  %s987_s1 = inlined_call_operand.vmem [shape: bf16[72,128], index: 1, kind: input, shape index: {}]   ;;  %s988_s2 = inlined_call_operand.vmem [shape: f32[1,128], index: 2, kind: input, shape index: {}]   ;;  %s989_s3 = inlined_call_operand.vmem [shape: f32[512,128], index: 3, kind: output, shape index: {}]  }
   0x1 LB: > { %s664_s13 = sadd.s32 4294967295, %s823_s12   ;;  %p668_p0 = scmp.ge.s32.totalorder %s823_s12, 1  ;;  %s823_s12 = sphi %s845_s12, %s13_s12  }
   0x2   : > { %p138_p1 = scmp.lt.s32.totalorder %s823_s12, 3 }
   0x4   : > { %p139_p2 = pnand %p668_p0, %p138_p1 }
   0x5   : > { %v796_v0 = vld [vmem:[%s987_s1] sm:$0xff] (!%p139_p2)   ;;  %v797_v1 = vld [vmem:[%s987_s1 + $0x8] sm:$0xff] (!%p139_p2)   ;;  %s669_s18 = sshll.u32 (!%p139_p2), %s664_s13, 5  ;;  %v798_v2 = vld [vmem:[%s987_s1 + $0x10] sm:$0xff] (!%p139_p2)   ;;  %vm330_vm0 = vcmask (!%p139_p2), 588800   ;;  %vm379_vm1 = vcmask (!%p139_p2), 1043456  }
   0x6   : > { %142 = sbr.rel (%p139_p2) target bundleno = 270 (0x10e), region = 32  ;;  %734 = vmatprep.subr.bf16.mxu0 (!%p139_p2), %v796_v0  ;;  %776 = vmatprep.subr.bf16.mxu1 (!%p139_p2), %v796_v0  ;;  %p163_p3 = scmp.lt.s32.totalorder (!%p139_p2), %s669_s18, 63  ;;  %v799_v3 = vld [vmem:[%s987_s1 + $0x18] sm:$0xff] (!%p139_p2)   ;;  %v800_v6 = vld [vmem:[%s987_s1 + $0x20] ss:$0 sps:$4 sm:$0xff] (!%p139_p2)  }
   0x7   : > { %735 = vmatpush3.bf16.msra.mxu0 (!%p139_p2), %v796_v0  ;;  %781 = vmatpush3.bf16.msra.mxu1 (!%p139_p2), %v796_v0  ;;  %v381_v7 = vsel (!%p139_p2), %vm379_vm1, %v800_v6, 0  ;;  %v911_v22 = vld [vmem:[%s988_s2] ss:$0 sm:$0xff] (!%p139_p2) }
   0x8   : > { %736 = vmatprep.subr.bf16.mxu0 (!%p139_p2), %v797_v1  ;;  %777 = vmatprep.subr.bf16.mxu1 (!%p139_p2), %v797_v1 }
   0xb   : > { %737 = vmatpush3.bf16.msra.mxu0 (!%p139_p2), %v797_v1  ;;  %782 = vmatpush3.bf16.msra.mxu1 (!%p139_p2), %v797_v1 }
   0xc   : > { %738 = vmatprep.subr.bf16.mxu0 (!%p139_p2), %v798_v2  ;;  %778 = vmatprep.subr.bf16.mxu1 (!%p139_p2), %v798_v2 }
   0xd   : > { %s991_s18 = smov (!%p163_p3, %s669_s18), 63 }
   0xe   : > { %s670_s21 = sshll.u32 %s991_s18, 2  ;;  %s672_s4 = sshll.u32 %s991_s18, 3 }
   0xf   : > { %s871_s26 = scalar_lea.vmem %s986_s0, %s670_s21  ;;  %739 = vmatpush3.bf16.msra.mxu0 %v798_v2  ;;  %783 = vmatpush3.bf16.msra.mxu1 %v798_v2  ;;  %s919_s7 = scalar_lea.vmem %s989_s3, %s672_s4 }
  0x10   : > { %v801_v4 = vld [vmem:[%s871_s26] sm:$0xff]   ;;  %740 = vmatprep.subr.bf16.mxu0 %v799_v3  ;;  %779 = vmatprep.subr.bf16.mxu1 %v799_v3  ;;  %v803_v8 = vld [vmem:[%s871_s26 + $0x8] sm:$0xff]   ;;  %v805_v10 = vld [vmem:[%s871_s26 + $0x10] sm:$0xff]  }
  0x11   : > { %v802_v5 = vld [vmem:[%s871_s26 + $0x40] sm:$0xff]   ;;  %744 = vmatprep.mubr.msk.bf16.mxu0 %vm330_vm0, %v801_v4  ;;  %v804_v9 = vld [vmem:[%s871_s26 + $0x48] sm:$0xff]   ;;  %v806_v11 = vld [vmem:[%s871_s26 + $0x50] sm:$0xff]  }
  0x12   : > { %760 = vmatprep.mubr.msk.bf16.mxu1 %vm330_vm0, %v802_v5  ;;  %v807_v12 = vld [vmem:[%s871_s26 + $0x18] sm:$0xff]   ;;  %v809_v14 = vld [vmem:[%s871_s26 + $0x20] sm:$0xff]   ;;  %v811_v16 = vld [vmem:[%s871_s26 + $0x28] sm:$0xff]  }
  0x13   : > { %741 = vmatpush3.bf16.msra.mxu0 %v799_v3  ;;  %784 = vmatpush3.bf16.msra.mxu1 %v799_v3  ;;  %v808_v13 = vld [vmem:[%s871_s26 + $0x58] sm:$0xff]   ;;  %v810_v15 = vld [vmem:[%s871_s26 + $0x60] sm:$0xff]   ;;  %v812_v17 = vld [vmem:[%s871_s26 + $0x68] sm:$0xff]  }
  0x14   : > { %786 = vmatprep.subr.msk.bf16.mxu0 %vm379_vm1, %v800_v6  ;;  %787 = vmatprep.subr.msk.bf16.mxu1 %vm379_vm1, %v800_v6  ;;  %v813_v18 = vld [vmem:[%s871_s26 + $0x30] sm:$0xff]   ;;  %v815_v20 = vld [vmem:[%s871_s26 + $0x38] sm:$0xff]  }
  0x15   : > { %v814_v19 = vld [vmem:[%s871_s26 + $0x70] sm:$0xff]   ;;  %v816_v21 = vld [vmem:[%s871_s26 + $0x78] sm:$0xff]  }
  0x17   : > { %743 = vmatpush3.bf16.msra.mxu0 %v381_v7  ;;  %785 = vmatpush3.bf16.msra.mxu1 %v381_v7 }
  0x1a   : > { %745 = vmatmul.mubr.msk.bf16.vlgmr.msra.gmra.mrb[0].mxu0 %vm330_vm0, %v803_v8  ;;  %761 = vmatmul.mubr.msk.bf16.vlgmr.msra.gmra.mrb[0].mxu1 %vm330_vm0, %v804_v9 }
  0x1b   : > { %748 = vmatprep.mubr.msk.bf16.mxu0 %vm330_vm0, %v805_v10  ;;  %764 = vmatprep.mubr.msk.bf16.mxu1 %vm330_vm0, %v806_v11 }
  0x22   : > { %749 = vmatmul.mubr.msk.bf16.gmra.mrb[4].mxu0 %vm330_vm0, %v807_v12  ;;  %765 = vmatmul.mubr.msk.bf16.gmra.mrb[4].mxu1 %vm330_vm0, %v808_v13 }
  0x23   : > { %752 = vmatprep.mubr.msk.bf16.mxu0 %vm330_vm0, %v809_v14  ;;  %768 = vmatprep.mubr.msk.bf16.mxu1 %vm330_vm0, %v810_v15 }
  0x2a   : > { %753 = vmatmul.mubr.msk.bf16.gmra.mrb[8].mxu0 %vm330_vm0, %v811_v16  ;;  %769 = vmatmul.mubr.msk.bf16.gmra.mrb[8].mxu1 %vm330_vm0, %v812_v17 }
  0x2b   : > { %756 = vmatprep.mubr.msk.bf16.mxu0 %vm330_vm0, %v813_v18  ;;  %772 = vmatprep.mubr.msk.bf16.mxu1 %vm330_vm0, %v814_v19 }
  0x32   : > { %757 = vmatmul.mubr.msk.bf16.gmra.mrb[12].mxu0 %vm330_vm0, %v815_v20  ;;  %773 = vmatmul.mubr.msk.bf16.gmra.mrb[12].mxu1 %vm330_vm0, %v816_v21 }
  0xed   : > { %v746_v23 = vpop.f32.mrb[0].mxu0  ;;  %v762_v24 = vpop.f32.mrb[0].mxu1 }
  0xee   : > { %v426_v25 = vadd.f32 %v746_v23, %v911_v22  ;;  %v490_v26 = vadd.f32 %v762_v24, %v911_v22  ;;  %v417_v27 = vpop.f32.mrb[1].mxu0  ;;  %v481_v28 = vpop.f32.mrb[1].mxu1 }
  0xef   : > { %v418_v29 = vadd.f32 %v911_v22, %v417_v27  ;;  %v482_v30 = vadd.f32 %v911_v22, %v481_v28  ;;  %v747_v31 = vpop.f32.mrb[2].mxu0  ;;  %v763_v32 = vpop.f32.mrb[2].mxu1 }
  0xf0   : > { %v546_v33 = vmax.f32 %v426_v25, 0.0  ;;  %v562_v34 = vmax.f32 %v490_v26, 0.0  ;;  %v429_v35 = vadd.f32 %v747_v31, %v911_v22  ;;  %v493_v36 = vadd.f32 %v763_v32, %v911_v22  ;;  %v420_v37 = vpop.f32.mrb[3].mxu0  ;;  %v484_v38 = vpop.f32.mrb[3].mxu1 }
  0xf1   : > { %v544_v39 = vmax.f32 %v418_v29, 0.0  ;;  %v560_v40 = vmax.f32 %v482_v30, 0.0  ;;  %v421_v41 = vadd.f32 %v911_v22, %v420_v37  ;;  %v485_v42 = vadd.f32 %v911_v22, %v484_v38 }
  0xf2   : > { %578 = vst [vmem:[%s919_s7 + $0x10] sm:$0xff] %v546_v33  ;;  %594 = vst [vmem:[%s919_s7 + $0x90] sm:$0xff] %v562_v34  ;;  %v547_v43 = vmax.f32 %v429_v35, 0.0  ;;  %v563_v44 = vmax.f32 %v493_v36, 0.0 }
  0xf3   : > { %576 = vst [vmem:[%s919_s7] sm:$0xff] %v544_v39  ;;  %592 = vst [vmem:[%s919_s7 + $0x80] sm:$0xff] %v560_v40  ;;  %v545_v45 = vmax.f32 %v421_v41, 0.0  ;;  %v561_v46 = vmax.f32 %v485_v42, 0.0 }
  0xf4   : > { %579 = vst [vmem:[%s919_s7 + $0x18] sm:$0xff] %v547_v43  ;;  %595 = vst [vmem:[%s919_s7 + $0x98] sm:$0xff] %v563_v44 }
  0xf5   : > { %577 = vst [vmem:[%s919_s7 + $0x8] sm:$0xff] %v545_v45  ;;  %593 = vst [vmem:[%s919_s7 + $0x88] sm:$0xff] %v561_v46  ;;  %v750_v47 = vpop.f32.mrb[4].mxu0  ;;  %v766_v48 = vpop.f32.mrb[4].mxu1 }
  0xf6   : > { %v442_v49 = vadd.f32 %v750_v47, %v911_v22  ;;  %v506_v50 = vadd.f32 %v766_v48, %v911_v22  ;;  %v433_v51 = vpop.f32.mrb[5].mxu0  ;;  %v497_v52 = vpop.f32.mrb[5].mxu1 }
  0xf7   : > { %v434_v53 = vadd.f32 %v911_v22, %v433_v51  ;;  %v498_v54 = vadd.f32 %v911_v22, %v497_v52  ;;  %v751_v55 = vpop.f32.mrb[6].mxu0  ;;  %v767_v56 = vpop.f32.mrb[6].mxu1 }
  0xf8   : > { %v550_v57 = vmax.f32 %v442_v49, 0.0  ;;  %v566_v58 = vmax.f32 %v506_v50, 0.0  ;;  %v445_v59 = vadd.f32 %v751_v55, %v911_v22  ;;  %v509_v60 = vadd.f32 %v767_v56, %v911_v22  ;;  %v436_v61 = vpop.f32.mrb[7].mxu0  ;;  %v500_v62 = vpop.f32.mrb[7].mxu1 }
  0xf9   : > { %v548_v63 = vmax.f32 %v434_v53, 0.0  ;;  %v564_v0 = vmax.f32 %v498_v54, 0.0  ;;  %v437_v1 = vadd.f32 %v911_v22, %v436_v61  ;;  %v501_v2 = vadd.f32 %v911_v22, %v500_v62 }
  0xfa   : > { %582 = vst [vmem:[%s919_s7 + $0x30] sm:$0xff] %v550_v57  ;;  %598 = vst [vmem:[%s919_s7 + $0xb0] sm:$0xff] %v566_v58  ;;  %v551_v3 = vmax.f32 %v445_v59, 0.0  ;;  %v567_v4 = vmax.f32 %v509_v60, 0.0 }
  0xfb   : > { %580 = vst [vmem:[%s919_s7 + $0x20] sm:$0xff] %v548_v63  ;;  %596 = vst [vmem:[%s919_s7 + $0xa0] sm:$0xff] %v564_v0  ;;  %v549_v5 = vmax.f32 %v437_v1, 0.0  ;;  %v565_v6 = vmax.f32 %v501_v2, 0.0 }
  0xfc   : > { %583 = vst [vmem:[%s919_s7 + $0x38] sm:$0xff] %v551_v3  ;;  %599 = vst [vmem:[%s919_s7 + $0xb8] sm:$0xff] %v567_v4 }
  0xfd   : > { %581 = vst [vmem:[%s919_s7 + $0x28] sm:$0xff] %v549_v5  ;;  %597 = vst [vmem:[%s919_s7 + $0xa8] sm:$0xff] %v565_v6  ;;  %v754_v7 = vpop.f32.mrb[8].mxu0  ;;  %v770_v8 = vpop.f32.mrb[8].mxu1 }
  0xfe   : > { %v458_v9 = vadd.f32 %v754_v7, %v911_v22  ;;  %v522_v10 = vadd.f32 %v770_v8, %v911_v22  ;;  %v449_v11 = vpop.f32.mrb[9].mxu0  ;;  %v513_v12 = vpop.f32.mrb[9].mxu1 }
  0xff   : > { %v450_v13 = vadd.f32 %v911_v22, %v449_v11  ;;  %v514_v14 = vadd.f32 %v911_v22, %v513_v12  ;;  %v755_v15 = vpop.f32.mrb[10].mxu0  ;;  %v771_v16 = vpop.f32.mrb[10].mxu1 }
 0x100   : > { %v554_v17 = vmax.f32 %v458_v9, 0.0  ;;  %v570_v18 = vmax.f32 %v522_v10, 0.0  ;;  %v461_v19 = vadd.f32 %v755_v15, %v911_v22  ;;  %v525_v20 = vadd.f32 %v771_v16, %v911_v22  ;;  %v452_v21 = vpop.f32.mrb[11].mxu0  ;;  %v516_v23 = vpop.f32.mrb[11].mxu1 }
 0x101   : > { %v552_v24 = vmax.f32 %v450_v13, 0.0  ;;  %v568_v25 = vmax.f32 %v514_v14, 0.0  ;;  %v453_v26 = vadd.f32 %v911_v22, %v452_v21  ;;  %v517_v27 = vadd.f32 %v911_v22, %v516_v23 }
 0x102   : > { %586 = vst [vmem:[%s919_s7 + $0x50] sm:$0xff] %v554_v17  ;;  %602 = vst [vmem:[%s919_s7 + $0xd0] sm:$0xff] %v570_v18  ;;  %v555_v28 = vmax.f32 %v461_v19, 0.0  ;;  %v571_v29 = vmax.f32 %v525_v20, 0.0 }
 0x103   : > { %584 = vst [vmem:[%s919_s7 + $0x40] sm:$0xff] %v552_v24  ;;  %600 = vst [vmem:[%s919_s7 + $0xc0] sm:$0xff] %v568_v25  ;;  %v553_v30 = vmax.f32 %v453_v26, 0.0  ;;  %v569_v31 = vmax.f32 %v517_v27, 0.0 }
 0x104   : > { %587 = vst [vmem:[%s919_s7 + $0x58] sm:$0xff] %v555_v28  ;;  %603 = vst [vmem:[%s919_s7 + $0xd8] sm:$0xff] %v571_v29 }
 0x105   : > { %585 = vst [vmem:[%s919_s7 + $0x48] sm:$0xff] %v553_v30  ;;  %601 = vst [vmem:[%s919_s7 + $0xc8] sm:$0xff] %v569_v31  ;;  %v758_v32 = vpop.f32.mrb[12].mxu0  ;;  %v774_v33 = vpop.f32.mrb[12].mxu1 }
 0x106   : > { %v474_v34 = vadd.f32 %v758_v32, %v911_v22  ;;  %v538_v35 = vadd.f32 %v774_v33, %v911_v22  ;;  %v465_v36 = vpop.f32.mrb[13].mxu0  ;;  %v529_v37 = vpop.f32.mrb[13].mxu1 }
 0x107   : > { %v466_v38 = vadd.f32 %v911_v22, %v465_v36  ;;  %v530_v39 = vadd.f32 %v911_v22, %v529_v37  ;;  %v759_v40 = vpop.f32.mrb[14].mxu0  ;;  %v775_v41 = vpop.f32.mrb[14].mxu1 }
 0x108   : > { %v558_v42 = vmax.f32 %v474_v34, 0.0  ;;  %v574_v43 = vmax.f32 %v538_v35, 0.0  ;;  %v477_v44 = vadd.f32 %v759_v40, %v911_v22  ;;  %v541_v45 = vadd.f32 %v775_v41, %v911_v22  ;;  %v468_v46 = vpop.f32.mrb[15].mxu0  ;;  %v532_v47 = vpop.f32.mrb[15].mxu1 }
 0x109   : > { %v556_v48 = vmax.f32 %v466_v38, 0.0  ;;  %v572_v49 = vmax.f32 %v530_v39, 0.0  ;;  %v469_v50 = vadd.f32 %v911_v22, %v468_v46  ;;  %v533_v51 = vadd.f32 %v911_v22, %v532_v47 }
 0x10a   : > { %590 = vst [vmem:[%s919_s7 + $0x70] sm:$0xff] %v558_v42  ;;  %606 = vst [vmem:[%s919_s7 + $0xf0] sm:$0xff] %v574_v43  ;;  %v559_v52 = vmax.f32 %v477_v44, 0.0  ;;  %v575_v53 = vmax.f32 %v541_v45, 0.0 }
 0x10b   : > { %588 = vst [vmem:[%s919_s7 + $0x60] sm:$0xff] %v556_v48  ;;  %604 = vst [vmem:[%s919_s7 + $0xe0] sm:$0xff] %v572_v49  ;;  %v557_v54 = vmax.f32 %v469_v50, 0.0  ;;  %v573_v55 = vmax.f32 %v533_v51, 0.0 }
 0x10c   : > { %591 = vst [vmem:[%s919_s7 + $0x78] sm:$0xff] %v559_v52  ;;  %607 = vst [vmem:[%s919_s7 + $0xf8] sm:$0xff] %v575_v53 }
 0x10d   : > { %589 = vst [vmem:[%s919_s7 + $0x68] sm:$0xff] %v557_v54  ;;  %605 = vst [vmem:[%s919_s7 + $0xe8] sm:$0xff] %v573_v55 }
 0x10e PF: > { %s13_s12 = sadd.s32 1, %s823_s12  }
 0x10f   : > { %p10_p4 = scmp.ge.s32.totalorder %s13_s12, 4  }
 0x111   :  { %12 = sbr.rel (!%p10_p4) target bundleno = 1 (0x1), region = 62 }

// kernel: complex_unet_forward.15
= control target key start
LH: loop header
LB: loop body
LE: loop exit
PB: predicated region body
PF: predicated region fallthrough
CT: control target
= control target key end

     0   :  { %s509_s12 = smov 0   ;;  %s552_s0 = inlined_call_operand.vmem [shape: bf16[128,72], index: 0, kind: input, shape index: {}]   ;;  %s553_s1 = inlined_call_operand.vmem [shape: bf16[72,128], index: 1, kind: input, shape index: {}]   ;;  %s554_s2 = inlined_call_operand.vmem [shape: f32[1,128], index: 2, kind: input, shape index: {}]   ;;  %s555_s3 = inlined_call_operand.vmem [shape: f32[128,128], index: 3, kind: output, shape index: {}]  }
   0x1 LB: > { %s400_s13 = sadd.s32 4294967295, %s487_s12   ;;  %p404_p0 = scmp.ge.s32.totalorder %s487_s12, 1  ;;  %s487_s12 = sphi %s509_s12, %s13_s12  }
   0x2   : > { %p138_p1 = scmp.lt.s32.totalorder %s487_s12, 3 }
   0x4   : > { %p139_p2 = pnand %p404_p0, %p138_p1 }
   0x5   : > { %v472_v0 = vld [vmem:[%s553_s1] sm:$0xff] (!%p139_p2)   ;;  %v473_v1 = vld [vmem:[%s553_s1 + $0x8] sm:$0xff] (!%p139_p2)   ;;  %s405_s18 = sshll.u32 (!%p139_p2), %s400_s13, 3  ;;  %v474_v2 = vld [vmem:[%s553_s1 + $0x10] sm:$0xff] (!%p139_p2)   ;;  %vm246_vm0 = vcmask (!%p139_p2), 588800   ;;  %vm259_vm1 = vcmask (!%p139_p2), 1043456  }
   0x6   : > { %142 = sbr.rel (%p139_p2) target bundleno = 246 (0xf6), region = 32  ;;  %434 = vmatprep.subr.bf16.mxu0 (!%p139_p2), %v472_v0  ;;  %452 = vmatprep.subr.bf16.mxu1 (!%p139_p2), %v472_v0  ;;  %p163_p3 = scmp.lt.s32.totalorder (!%p139_p2), %s405_s18, 15  ;;  %v475_v3 = vld [vmem:[%s553_s1 + $0x18] sm:$0xff] (!%p139_p2)   ;;  %v476_v6 = vld [vmem:[%s553_s1 + $0x20] ss:$0 sps:$4 sm:$0xff] (!%p139_p2)  }
   0x7   : > { %435 = vmatpush3.bf16.msra.mxu0 (!%p139_p2), %v472_v0  ;;  %457 = vmatpush3.bf16.msra.mxu1 (!%p139_p2), %v472_v0  ;;  %v261_v7 = vsel (!%p139_p2), %vm259_vm1, %v476_v6, 0  ;;  %v409_v10 = vld [vmem:[%s554_s2] ss:$0 sm:$0xff] (!%p139_p2) }
   0x8   : > { %436 = vmatprep.subr.bf16.mxu0 (!%p139_p2), %v473_v1  ;;  %453 = vmatprep.subr.bf16.mxu1 (!%p139_p2), %v473_v1 }
   0xb   : > { %437 = vmatpush3.bf16.msra.mxu0 (!%p139_p2), %v473_v1  ;;  %458 = vmatpush3.bf16.msra.mxu1 (!%p139_p2), %v473_v1 }
   0xc   : > { %438 = vmatprep.subr.bf16.mxu0 (!%p139_p2), %v474_v2  ;;  %454 = vmatprep.subr.bf16.mxu1 (!%p139_p2), %v474_v2 }
   0xd   : > { %s557_s18 = smov (!%p163_p3, %s405_s18), 15 }
   0xe   : > { %s406_s21 = sshll.u32 %s557_s18, 2  ;;  %s408_s4 = sshll.u32 %s557_s18, 3 }
   0xf   : > { %s166_s26 = scalar_lea.vmem %s552_s0, %s406_s21  ;;  %439 = vmatpush3.bf16.msra.mxu0 %v474_v2  ;;  %459 = vmatpush3.bf16.msra.mxu1 %v474_v2  ;;  %s172_s7 = scalar_lea.vmem %s555_s3, %s408_s4 }
  0x10   : > { %v477_v4 = vld [vmem:[%s166_s26] sm:$0xff]   ;;  %v478_v5 = vld [vmem:[%s166_s26 + $0x10] sm:$0xff]   ;;  %440 = vmatprep.subr.bf16.mxu0 %v475_v3  ;;  %455 = vmatprep.subr.bf16.mxu1 %v475_v3  ;;  %v479_v8 = vld [vmem:[%s166_s26 + $0x8] sm:$0xff]  }
  0x11   : > { %444 = vmatprep.mubr.msk.bf16.mxu0 %vm246_vm0, %v477_v4  ;;  %448 = vmatprep.mubr.msk.bf16.mxu1 %vm246_vm0, %v478_v5  ;;  %v480_v9 = vld [vmem:[%s166_s26 + $0x18] sm:$0xff]  }
  0x13   : > { %441 = vmatpush3.bf16.msra.mxu0 %v475_v3  ;;  %460 = vmatpush3.bf16.msra.mxu1 %v475_v3 }
  0x14   : > { %462 = vmatprep.subr.msk.bf16.mxu0 %vm259_vm1, %v476_v6  ;;  %463 = vmatprep.subr.msk.bf16.mxu1 %vm259_vm1, %v476_v6 }
  0x17   : > { %443 = vmatpush3.bf16.msra.mxu0 %v261_v7  ;;  %461 = vmatpush3.bf16.msra.mxu1 %v261_v7 }
  0x1a   : > { %445 = vmatmul.mubr.msk.bf16.vlgmr.msra.gmra.mrb[0].mxu0 %vm246_vm0, %v479_v8  ;;  %449 = vmatmul.mubr.msk.bf16.vlgmr.msra.gmra.mrb[0].mxu1 %vm246_vm0, %v480_v9 }
  0xed   : > { %v446_v11 = vpop.f32.mrb[0].mxu0  ;;  %v450_v12 = vpop.f32.mrb[0].mxu1 }
  0xee   : > { %v306_v13 = vadd.f32 %v446_v11, %v409_v10  ;;  %v322_v14 = vadd.f32 %v450_v12, %v409_v10  ;;  %v297_v15 = vpop.f32.mrb[1].mxu0  ;;  %v313_v16 = vpop.f32.mrb[1].mxu1 }
  0xef   : > { %v298_v17 = vadd.f32 %v409_v10, %v297_v15  ;;  %v314_v18 = vadd.f32 %v409_v10, %v313_v16  ;;  %v447_v19 = vpop.f32.mrb[2].mxu0  ;;  %v451_v20 = vpop.f32.mrb[2].mxu1 }
  0xf0   : > { %v330_v21 = vmax.f32 %v306_v13, 0.0  ;;  %v334_v22 = vmax.f32 %v322_v14, 0.0  ;;  %v309_v23 = vadd.f32 %v447_v19, %v409_v10  ;;  %v325_v24 = vadd.f32 %v451_v20, %v409_v10  ;;  %v300_v25 = vpop.f32.mrb[3].mxu0  ;;  %v316_v26 = vpop.f32.mrb[3].mxu1 }
  0xf1   : > { %v328_v27 = vmax.f32 %v298_v17, 0.0  ;;  %v332_v28 = vmax.f32 %v314_v18, 0.0  ;;  %v301_v29 = vadd.f32 %v409_v10, %v300_v25  ;;  %v317_v30 = vadd.f32 %v409_v10, %v316_v26 }
  0xf2   : > { %338 = vst [vmem:[%s172_s7 + $0x10] sm:$0xff] %v330_v21  ;;  %342 = vst [vmem:[%s172_s7 + $0x30] sm:$0xff] %v334_v22  ;;  %v331_v31 = vmax.f32 %v309_v23, 0.0  ;;  %v335_v32 = vmax.f32 %v325_v24, 0.0 }
  0xf3   : > { %336 = vst [vmem:[%s172_s7] sm:$0xff] %v328_v27  ;;  %340 = vst [vmem:[%s172_s7 + $0x20] sm:$0xff] %v332_v28  ;;  %v329_v33 = vmax.f32 %v301_v29, 0.0  ;;  %v333_v34 = vmax.f32 %v317_v30, 0.0 }
  0xf4   : > { %339 = vst [vmem:[%s172_s7 + $0x18] sm:$0xff] %v331_v31  ;;  %343 = vst [vmem:[%s172_s7 + $0x38] sm:$0xff] %v335_v32 }
  0xf5   : > { %337 = vst [vmem:[%s172_s7 + $0x8] sm:$0xff] %v329_v33  ;;  %341 = vst [vmem:[%s172_s7 + $0x28] sm:$0xff] %v333_v34 }
  0xf6 PF: > { %s13_s12 = sadd.s32 1, %s487_s12  }
  0xf7   : > { %p10_p4 = scmp.ge.s32.totalorder %s13_s12, 4  }
  0xf9   :  { %12 = sbr.rel (!%p10_p4) target bundleno = 1 (0x1), region = 62 }

// kernel: complex_unet_forward.16
= control target key start
LH: loop header
LB: loop body
LE: loop exit
PB: predicated region body
PF: predicated region fallthrough
CT: control target
= control target key end

     0   :  { %s563_s12 = smov 0   ;;  %s641_s0 = inlined_call_operand.vmem [shape: bf16[128,144], index: 0, kind: input, shape index: {}]   ;;  %s642_s1 = inlined_call_operand.vmem [shape: bf16[144,128], index: 1, kind: input, shape index: {}]   ;;  %s643_s2 = inlined_call_operand.vmem [shape: f32[1,128], index: 2, kind: input, shape index: {}]   ;;  %s644_s3 = inlined_call_operand.vmem [shape: f32[128,128], index: 3, kind: output, shape index: {}]  }
   0x1 LB: > { %s451_s13 = sadd.s32 4294967295, %s540_s12   ;;  %p455_p0 = scmp.ge.s32.totalorder %s540_s12, 1  ;;  %s540_s12 = sphi %s563_s12, %s13_s12  }
   0x2   : > { %p139_p1 = scmp.lt.s32.totalorder %s540_s12, 3 }
   0x4   : > { %p140_p2 = pnand %p455_p0, %p139_p1 }
   0x5   : > { %v513_v0 = vld [vmem:[%s642_s1] sm:$0xff] (!%p140_p2)   ;;  %v542_v1 = vmov (!%p140_p2), 0   ;;  %s456_s16 = sshll.u32 (!%p140_p2), %s451_s13, 3  ;;  %v514_v2 = vld [vmem:[%s642_s1 + $0x8] sm:$0xff] (!%p140_p2)   ;;  %v515_v3 = vld [vmem:[%s642_s1 + $0x10] sm:$0xff] (!%p140_p2)   ;;  %vm301_vm0 = vcmask (!%p140_p2), 130048  }
   0x6   : > { %143 = sbr.rel (%p140_p2) target bundleno = 269 (0x10d), region = 32  ;;  %314 = vmatprep.subr.bf16.mxu0 (!%p140_p2), %v542_v1  ;;  %486 = vmatprep.subr.bf16.mxu1 (!%p140_p2), %v542_v1  ;;  %p165_p3 = scmp.lt.s32.totalorder (!%p140_p2), %s456_s16, 15  ;;  %v516_v4 = vld [vmem:[%s642_s1 + $0x18] sm:$0xff] (!%p140_p2)   ;;  %v517_v7 = vld [vmem:[%s642_s1 + $0x20] sm:$0xff] (!%p140_p2)   ;;  %v518_v8 = vld [vmem:[%s642_s1 + $0x28] sm:$0xff] (!%p140_p2)  }
   0x7   : > { %315 = vmatpush1.bf16.msra.mxu0 (!%p140_p2), %v513_v0  ;;  %495 = vmatpush1.bf16.msra.mxu1 (!%p140_p2), %v513_v0  ;;  %v519_v9 = vld [vmem:[%s642_s1 + $0x30] sm:$0xff] (!%p140_p2)   ;;  %v520_v10 = vld [vmem:[%s642_s1 + $0x38] sm:$0xff] (!%p140_p2)   ;;  %v521_v11 = vld [vmem:[%s642_s1 + $0x40] sm:$0xff] (!%p140_p2)  }
   0x8   : > { %316 = vmatprep.subr.bf16.mxu0 (!%p140_p2), %v542_v1  ;;  %487 = vmatprep.subr.bf16.mxu1 (!%p140_p2), %v542_v1  ;;  %v461_v18 = vld [vmem:[%s643_s2] ss:$0 sm:$0xff] (!%p140_p2) }
   0xb   : > { %317 = vmatpush1.bf16.msra.mxu0 (!%p140_p2), %v514_v2  ;;  %496 = vmatpush1.bf16.msra.mxu1 (!%p140_p2), %v514_v2 }
   0xc   : > { %318 = vmatprep.subr.bf16.mxu0 (!%p140_p2), %v542_v1  ;;  %488 = vmatprep.subr.bf16.mxu1 (!%p140_p2), %v542_v1 }
   0xd   : > { %s646_s16 = smov (!%p165_p3, %s456_s16), 15 }
   0xe   : > { %s485_s21 = sshll.u32 %s646_s16, 3 }
   0xf   : > { %s588_s24 = scalar_lea.vmem %s641_s0, %s485_s21  ;;  %319 = vmatpush1.bf16.msra.mxu0 %v515_v3  ;;  %497 = vmatpush1.bf16.msra.mxu1 %v515_v3  ;;  %s628_s15 = scalar_lea.vmem %s644_s3, %s485_s21 }
  0x10   : > { %v524_v5 = vld [vmem:[%s588_s24 + $0x4] ss:$8 sps:$4 sm:$0xff]   ;;  %320 = vmatprep.subr.bf16.mxu0 %v542_v1  ;;  %489 = vmatprep.subr.bf16.mxu1 %v542_v1  ;;  %v522_v12 = vld [vmem:[%s588_s24] ss:$8 sps:$4 sm:$0xff]   ;;  %v528_v14 = vld [vmem:[%s588_s24 + $0x14] ss:$8 sps:$4 sm:$0xff]  }
  0x11   : > { %v527_v6 = vld [vmem:[%s588_s24 + $0x24] ss:$8 sps:$4 sm:$0xff]   ;;  %479 = vmatprep.mubr.msk.bf16.mxu0 %vm301_vm0, %v524_v5  ;;  %v525_v13 = vld [vmem:[%s588_s24 + $0x20] ss:$8 sps:$4 sm:$0xff]   ;;  %v530_v15 = vld [vmem:[%s588_s24 + $0x34] ss:$8 sps:$4 sm:$0xff]  }
  0x12   : > { %481 = vmatprep.mubr.msk.bf16.mxu1 %vm301_vm0, %v527_v6  ;;  %v532_v16 = vld [vmem:[%s588_s24 + $0x10] ss:$8 sps:$4 sm:$0xff]  }
  0x13   : > { %321 = vmatpush1.bf16.msra.mxu0 %v516_v4  ;;  %498 = vmatpush1.bf16.msra.mxu1 %v516_v4  ;;  %v533_v17 = vld [vmem:[%s588_s24 + $0x30] ss:$8 sps:$4 sm:$0xff]  }
  0x14   : > { %322 = vmatprep.subr.bf16.mxu0 %v542_v1  ;;  %490 = vmatprep.subr.bf16.mxu1 %v542_v1 }
  0x17   : > { %323 = vmatpush1.bf16.msra.mxu0 %v517_v7  ;;  %499 = vmatpush1.bf16.msra.mxu1 %v517_v7 }
  0x18   : > { %324 = vmatprep.subr.bf16.mxu0 %v542_v1  ;;  %491 = vmatprep.subr.bf16.mxu1 %v542_v1 }
  0x1b   : > { %325 = vmatpush1.bf16.msra.mxu0 %v518_v8  ;;  %500 = vmatpush1.bf16.msra.mxu1 %v518_v8 }
  0x1c   : > { %326 = vmatprep.subr.bf16.mxu0 %v542_v1  ;;  %492 = vmatprep.subr.bf16.mxu1 %v542_v1 }
  0x1f   : > { %327 = vmatpush1.bf16.msra.mxu0 %v519_v9  ;;  %501 = vmatpush1.bf16.msra.mxu1 %v519_v9 }
  0x20   : > { %328 = vmatprep.subr.bf16.mxu0 %v542_v1  ;;  %493 = vmatprep.subr.bf16.mxu1 %v542_v1 }
  0x23   : > { %329 = vmatpush1.bf16.msra.mxu0 %v520_v10  ;;  %502 = vmatpush1.bf16.msra.mxu1 %v520_v10 }
  0x24   : > { %330 = vmatprep.subr.bf16.mxu0 %v542_v1  ;;  %494 = vmatprep.subr.bf16.mxu1 %v542_v1 }
  0x27   : > { %331 = vmatpush1.bf16.msra.mxu0 %v521_v11  ;;  %503 = vmatpush1.bf16.msra.mxu1 %v521_v11 }
  0x2a   : > { %347 = vmatmul.mubr.bf16.vlgmr.msra.gmra.mrb[0].mxu0 %v522_v12  ;;  %363 = vmatmul.mubr.bf16.vlgmr.msra.gmra.mrb[0].mxu1 %v525_v13 }
  0x2b   : > { %480 = vmatprep.mubr.msk.bf16.mxu0 %vm301_vm0, %v528_v14  ;;  %482 = vmatprep.mubr.msk.bf16.mxu1 %vm301_vm0, %v530_v15 }
  0x32   : > { %355 = vmatmul.mubr.bf16.gmra.mrb[4].mxu0 %v532_v16  ;;  %371 = vmatmul.mubr.bf16.gmra.mrb[4].mxu1 %v533_v17 }
  0xfd   : > { %v348_v19 = vpop.f32.mrb[0].mxu0  ;;  %v364_v20 = vpop.f32.mrb[0].mxu1 }
  0xfe   : > { %v349_v21 = vadd.f32 %v461_v18, %v348_v19  ;;  %v365_v22 = vadd.f32 %v461_v18, %v364_v20  ;;  %v350_v23 = vpop.f32.mrb[1].mxu0  ;;  %v366_v24 = vpop.f32.mrb[1].mxu1 }
  0xff   : > { %v351_v25 = vpop.f32.mrb[2].mxu0  ;;  %v367_v26 = vpop.f32.mrb[2].mxu1 }
 0x100   : > { %v379_v27 = vmax.f32 %v349_v21, 0.0  ;;  %v383_v28 = vmax.f32 %v365_v22, 0.0  ;;  %v352_v29 = vadd.f32 %v461_v18, %v351_v25  ;;  %v368_v30 = vadd.f32 %v461_v18, %v367_v26  ;;  %v353_v31 = vpop.f32.mrb[3].mxu0  ;;  %v369_v32 = vpop.f32.mrb[3].mxu1 }
 0x102   : > { %387 = vst [vmem:[%s628_s15] sm:$0xff] %v379_v27  ;;  %391 = vst [vmem:[%s628_s15 + $0x20] sm:$0xff] %v383_v28  ;;  %v380_v33 = vmax.f32 %v352_v29, 0.0  ;;  %v384_v34 = vmax.f32 %v368_v30, 0.0 }
 0x104   : > { %388 = vst [vmem:[%s628_s15 + $0x8] sm:$0xff] %v380_v33  ;;  %392 = vst [vmem:[%s628_s15 + $0x28] sm:$0xff] %v384_v34 }
 0x105   : > { %v356_v35 = vpop.f32.mrb[4].mxu0  ;;  %v372_v36 = vpop.f32.mrb[4].mxu1 }
 0x106   : > { %v357_v37 = vadd.f32 %v461_v18, %v356_v35  ;;  %v373_v38 = vadd.f32 %v461_v18, %v372_v36  ;;  %v358_v39 = vpop.f32.mrb[5].mxu0  ;;  %v374_v40 = vpop.f32.mrb[5].mxu1 }
 0x107   : > { %v359_v41 = vpop.f32.mrb[6].mxu0  ;;  %v375_v42 = vpop.f32.mrb[6].mxu1 }
 0x108   : > { %v381_v43 = vmax.f32 %v357_v37, 0.0  ;;  %v385_v44 = vmax.f32 %v373_v38, 0.0  ;;  %v360_v45 = vadd.f32 %v461_v18, %v359_v41  ;;  %v376_v46 = vadd.f32 %v461_v18, %v375_v42  ;;  %v361_v47 = vpop.f32.mrb[7].mxu0  ;;  %v377_v48 = vpop.f32.mrb[7].mxu1 }
 0x10a   : > { %389 = vst [vmem:[%s628_s15 + $0x10] sm:$0xff] %v381_v43  ;;  %393 = vst [vmem:[%s628_s15 + $0x30] sm:$0xff] %v385_v44  ;;  %v382_v49 = vmax.f32 %v360_v45, 0.0  ;;  %v386_v50 = vmax.f32 %v376_v46, 0.0 }
 0x10c   : > { %390 = vst [vmem:[%s628_s15 + $0x18] sm:$0xff] %v382_v49  ;;  %394 = vst [vmem:[%s628_s15 + $0x38] sm:$0xff] %v386_v50 }
 0x10d PF: > { %s13_s12 = sadd.s32 1, %s540_s12  }
 0x10e   : > { %p10_p4 = scmp.ge.s32.totalorder %s13_s12, 4  }
 0x110   :  { %12 = sbr.rel (!%p10_p4) target bundleno = 1 (0x1), region = 62 }

// kernel: complex_unet_forward.17
= control target key start
LH: loop header
LB: loop body
LE: loop exit
PB: predicated region body
PF: predicated region fallthrough
CT: control target
= control target key end

     0   :  { %s449_s12 = smov 0   ;;  %s503_s0 = inlined_call_operand.vmem [shape: bf16[32,144], index: 0, kind: input, shape index: {}]   ;;  %s504_s1 = inlined_call_operand.vmem [shape: bf16[144,128], index: 1, kind: input, shape index: {}]   ;;  %s505_s2 = inlined_call_operand.vmem [shape: f32[1,128], index: 2, kind: input, shape index: {}]   ;;  %s506_s3 = inlined_call_operand.vmem [shape: f32[32,128], index: 3, kind: output, shape index: {}]  }
   0x1 LB: > { %s373_s13 = sadd.s32 4294967295, %s426_s12   ;;  %p377_p0 = scmp.ge.s32.totalorder %s426_s12, 1  ;;  %s426_s12 = sphi %s449_s12, %s13_s12  }
   0x2   : > { %p139_p1 = scmp.lt.s32.totalorder %s426_s12, 3 }
   0x4   : > { %p140_p2 = pnand %p377_p0, %p139_p1 }
   0x5   : > { %v408_v0 = vld [vmem:[%s504_s1] sm:$0xff] (!%p140_p2)   ;;  %v428_v1 = vmov (!%p140_p2), 0   ;;  %s378_s16 = sshll.u32 (!%p140_p2), %s373_s13, 1  ;;  %v409_v2 = vld [vmem:[%s504_s1 + $0x8] sm:$0xff] (!%p140_p2)   ;;  %v410_v3 = vld [vmem:[%s504_s1 + $0x10] sm:$0xff] (!%p140_p2)   ;;  %vm268_vm0 = vcmask (!%p140_p2), 130048  }
   0x6   : > { %143 = sbr.rel (%p140_p2) target bundleno = 261 (0x105), region = 32  ;;  %272 = vmatprep.subr.bf16.mxu0 (!%p140_p2), %v428_v1  ;;  %p165_p3 = scmp.lt.s32.totalorder (!%p140_p2), %s378_s16, 3  ;;  %v411_v4 = vld [vmem:[%s504_s1 + $0x18] sm:$0xff] (!%p140_p2)   ;;  %v412_v6 = vld [vmem:[%s504_s1 + $0x20] sm:$0xff] (!%p140_p2)   ;;  %v413_v7 = vld [vmem:[%s504_s1 + $0x28] sm:$0xff] (!%p140_p2)  }
   0x7   : > { %273 = vmatpush1.bf16.msra.mxu0 (!%p140_p2), %v408_v0  ;;  %v414_v8 = vld [vmem:[%s504_s1 + $0x30] sm:$0xff] (!%p140_p2)   ;;  %v415_v9 = vld [vmem:[%s504_s1 + $0x38] sm:$0xff] (!%p140_p2)   ;;  %v416_v10 = vld [vmem:[%s504_s1 + $0x40] sm:$0xff] (!%p140_p2)  }
   0x8   : > { %274 = vmatprep.subr.bf16.mxu0 (!%p140_p2), %v428_v1  ;;  %v383_v12 = vld [vmem:[%s505_s2] ss:$0 sm:$0xff] (!%p140_p2) }
   0xb   : > { %275 = vmatpush1.bf16.msra.mxu0 (!%p140_p2), %v409_v2 }
   0xc   : > { %276 = vmatprep.subr.bf16.mxu0 (!%p140_p2), %v428_v1 }
   0xd   : > { %s508_s16 = smov (!%p165_p3, %s378_s16), 3 }
   0xe   : > { %s398_s21 = sshll.u32 %s508_s16, 3 }
   0xf   : > { %s169_s24 = scalar_lea.vmem %s503_s0, %s398_s21  ;;  %277 = vmatpush1.bf16.msra.mxu0 %v410_v3  ;;  %s175_s15 = scalar_lea.vmem %s506_s3, %s398_s21 }
  0x10   : > { %v419_v5 = vld [vmem:[%s169_s24 + $0x4] ss:$8 sps:$4 sm:$0xff]   ;;  %278 = vmatprep.subr.bf16.mxu0 %v428_v1  ;;  %v417_v11 = vld [vmem:[%s169_s24] ss:$8 sps:$4 sm:$0xff]  }
  0x11   : > { %395 = vmatprep.mubr.msk.bf16.mxu0 %vm268_vm0, %v419_v5 }
  0x13   : > { %279 = vmatpush1.bf16.msra.mxu0 %v411_v4 }
  0x14   : > { %280 = vmatprep.subr.bf16.mxu0 %v428_v1 }
  0x17   : > { %281 = vmatpush1.bf16.msra.mxu0 %v412_v6 }
  0x18   : > { %282 = vmatprep.subr.bf16.mxu0 %v428_v1 }
  0x1b   : > { %283 = vmatpush1.bf16.msra.mxu0 %v413_v7 }
  0x1c   : > { %284 = vmatprep.subr.bf16.mxu0 %v428_v1 }
  0x1f   : > { %285 = vmatpush1.bf16.msra.mxu0 %v414_v8 }
  0x20   : > { %286 = vmatprep.subr.bf16.mxu0 %v428_v1 }
  0x23   : > { %287 = vmatpush1.bf16.msra.mxu0 %v415_v9 }
  0x24   : > { %288 = vmatprep.subr.bf16.mxu0 %v428_v1 }
  0x27   : > { %289 = vmatpush1.bf16.msra.mxu0 %v416_v10 }
  0x2a   : > { %305 = vmatmul.mubr.bf16.vlgmr.msra.gmra.mrb[0].mxu0 %v417_v11 }
  0xfd   : > { %v306_v13 = vpop.f32.mrb[0].mxu0 }
  0xfe   : > { %v307_v14 = vadd.f32 %v383_v12, %v306_v13  ;;  %v308_v15 = vpop.f32.mrb[1].mxu0 }
  0xff   : > { %v309_v16 = vpop.f32.mrb[2].mxu0 }
 0x100   : > { %v313_v17 = vmax.f32 %v307_v14, 0.0  ;;  %v310_v18 = vadd.f32 %v383_v12, %v309_v16  ;;  %v311_v19 = vpop.f32.mrb[3].mxu0 }
 0x102   : > { %315 = vst [vmem:[%s175_s15] sm:$0xff] %v313_v17  ;;  %v314_v20 = vmax.f32 %v310_v18, 0.0 }
 0x104   : > { %316 = vst [vmem:[%s175_s15 + $0x8] sm:$0xff] %v314_v20 }
 0x105 PF: > { %s13_s12 = sadd.s32 1, %s426_s12  }
 0x106   : > { %p10_p4 = scmp.ge.s32.totalorder %s13_s12, 4  }
 0x108   :  { %12 = sbr.rel (!%p10_p4) target bundleno = 1 (0x1), region = 62 }

// kernel: complex_unet_forward.20
= control target key start
LH: loop header
LB: loop body
LE: loop exit
PB: predicated region body
PF: predicated region fallthrough
CT: control target
= control target key end

     0   :  { %s811_s12 = smov 0   ;;  %s917_s0 = inlined_call_operand.vmem [shape: bf16[128,288], index: 0, kind: input, shape index: {}]   ;;  %s918_s1 = inlined_call_operand.vmem [shape: bf16[288,128], index: 1, kind: input, shape index: {}]   ;;  %s919_s2 = inlined_call_operand.vmem [shape: f32[1,128], index: 2, kind: input, shape index: {}]   ;;  %s920_s3 = inlined_call_operand.vmem [shape: f32[128,128], index: 3, kind: output, shape index: {}]  }
   0x1 LB: > { %s620_s13 = sadd.s32 4294967295, %s789_s12   ;;  %p624_p0 = scmp.ge.s32.totalorder %s789_s12, 1  ;;  %s789_s12 = sphi %s811_s12, %s13_s12  }
   0x2   : > { %p139_p1 = scmp.lt.s32.totalorder %s789_s12, 3 }
   0x4   : > { %p140_p2 = pnand %p624_p0, %p139_p1 }
   0x5   : > { %v749_v0 = vld [vmem:[%s918_s1 + $0x40] sm:$0xff] (!%p140_p2)   ;;  %s625_s16 = sshll.u32 (!%p140_p2), %s620_s13, 3  ;;  %v751_v2 = vld [vmem:[%s918_s1 + $0x48] sm:$0xff] (!%p140_p2)   ;;  %v753_v4 = vld [vmem:[%s918_s1 + $0x50] sm:$0xff] (!%p140_p2)   ;;  %vm405_vm0 = vcmask (!%p140_p2), 261120  }
   0x6   : > { %143 = sbr.rel (%p140_p2) target bundleno = 278 (0x116), region = 32  ;;  %v750_v1 = vld [vmem:[%s918_s1] sm:$0xff] (!%p140_p2)   ;;  %666 = vmatprep.subr.bf16.mxu0 (!%p140_p2), %v749_v0  ;;  %724 = vmatprep.subr.bf16.mxu1 (!%p140_p2), %v749_v0  ;;  %p165_p3 = scmp.lt.s32.totalorder (!%p140_p2), %s625_s16, 15  ;;  %v752_v3 = vld [vmem:[%s918_s1 + $0x8] sm:$0xff] (!%p140_p2)   ;;  %v754_v5 = vld [vmem:[%s918_s1 + $0x10] sm:$0xff] (!%p140_p2)  }
   0x7   : > { %667 = vmatpush3.bf16.msra.mxu0 (!%p140_p2), %v750_v1  ;;  %732 = vmatpush3.bf16.msra.mxu1 (!%p140_p2), %v750_v1  ;;  %v755_v6 = vld [vmem:[%s918_s1 + $0x58] sm:$0xff] (!%p140_p2)   ;;  %v757_v8 = vld [vmem:[%s918_s1 + $0x60] sm:$0xff] (!%p140_p2)   ;;  %v759_v10 = vld [vmem:[%s918_s1 + $0x68] sm:$0xff] (!%p140_p2)  }
   0x8   : > { %668 = vmatprep.subr.bf16.mxu0 (!%p140_p2), %v751_v2  ;;  %725 = vmatprep.subr.bf16.mxu1 (!%p140_p2), %v751_v2  ;;  %v756_v7 = vld [vmem:[%s918_s1 + $0x18] sm:$0xff] (!%p140_p2)   ;;  %v758_v9 = vld [vmem:[%s918_s1 + $0x20] sm:$0xff] (!%p140_p2)   ;;  %v760_v13 = vld [vmem:[%s918_s1 + $0x28] sm:$0xff] (!%p140_p2)  }
   0x9   : > { %v761_v14 = vld [vmem:[%s918_s1 + $0x70] sm:$0xff] (!%p140_p2)   ;;  %v763_v16 = vld [vmem:[%s918_s1 + $0x78] sm:$0xff] (!%p140_p2)   ;;  %v771_v18 = vld [vmem:[%s918_s1 + $0x80] sm:$0xff] (!%p140_p2)  }
   0xa   : > { %v762_v15 = vld [vmem:[%s918_s1 + $0x30] sm:$0xff] (!%p140_p2)   ;;  %v764_v17 = vld [vmem:[%s918_s1 + $0x38] sm:$0xff] (!%p140_p2)   ;;  %v772_v22 = vld [vmem:[%s918_s1 + $0x88] sm:$0xff] (!%p140_p2)  }
   0xb   : > { %669 = vmatpush3.bf16.msra.mxu0 (!%p140_p2), %v752_v3  ;;  %733 = vmatpush3.bf16.msra.mxu1 (!%p140_p2), %v752_v3  ;;  %v629_v42 = vld [vmem:[%s919_s2] ss:$0 sm:$0xff] (!%p140_p2) }
   0xc   : > { %670 = vmatprep.subr.bf16.mxu0 (!%p140_p2), %v753_v4  ;;  %726 = vmatprep.subr.bf16.mxu1 (!%p140_p2), %v753_v4 }
   0xd   : > { %s922_s16 = smov (!%p165_p3, %s625_s16), 15 }
   0xe   : > { %s740_s29 = smul.u32 12, %s922_s16  ;;  %s628_s5 = sshll.u32 %s922_s16, 3 }
   0xf   : > { %671 = vmatpush3.bf16.msra.mxu0 %v754_v5  ;;  %734 = vmatpush3.bf16.msra.mxu1 %v754_v5  ;;  %s904_s8 = scalar_lea.vmem %s920_s3, %s628_s5 }
  0x10   : > { %672 = vmatprep.subr.bf16.mxu0 %v755_v6  ;;  %727 = vmatprep.subr.bf16.mxu1 %v755_v6  ;;  %s852_s9 = scalar_lea.vmem %s917_s0, %s740_s29 }
  0x11   : > { %v767_v11 = vld [vmem:[%s852_s9 + $0x4] ss:$12 sps:$4 sm:$0xff]   ;;  %v770_v12 = vld [vmem:[%s852_s9 + $0x4c] ss:$12 sps:$4 sm:$0xff]   ;;  %v768_v20 = vld [vmem:[%s852_s9 + $0x48] ss:$12 sps:$4 sm:$0xff]  }
  0x12   : > { %450 = vmatprep.mubr.bf16.mxu0 %v767_v11  ;;  %474 = vmatprep.mubr.bf16.mxu1 %v770_v12  ;;  %v765_v19 = vld [vmem:[%s852_s9] ss:$12 sps:$4 sm:$0xff]   ;;  %v773_v21 = vld [vmem:[%s852_s9 + $0x1c] ss:$12 sps:$4 sm:$0xff]   ;;  %v776_v24 = vld [vmem:[%s852_s9 + $0x18] ss:$12 sps:$4 sm:$0xff]  }
  0x13   : > { %673 = vmatpush3.bf16.msra.mxu0 %v756_v7  ;;  %735 = vmatpush3.bf16.msra.mxu1 %v756_v7  ;;  %v775_v23 = vld [vmem:[%s852_s9 + $0x8] ss:$12 sps:$4 sm:$0xff]   ;;  %v777_v25 = vld [vmem:[%s852_s9 + $0x20] ss:$12 sps:$4 sm:$0xff]   ;;  %v780_v27 = vld [vmem:[%s852_s9 + $0x38] ss:$12 sps:$4 sm:$0xff]  }
  0x14   : > { %674 = vmatprep.subr.bf16.mxu0 %v757_v8  ;;  %728 = vmatprep.subr.bf16.mxu1 %v757_v8  ;;  %v778_v26 = vld [vmem:[%s852_s9 + $0x34] ss:$12 sps:$4 sm:$0xff]   ;;  %v781_v28 = vld [vmem:[%s852_s9 + $0x30] ss:$12 sps:$4 sm:$0xff]  }
  0x15   : > { %v782_v29 = vld [vmem:[%s852_s9 + $0x50] ss:$12 sps:$4 sm:$0xff]  }
  0x17   : > { %675 = vmatpush3.bf16.msra.mxu0 %v758_v9  ;;  %736 = vmatpush3.bf16.msra.mxu1 %v758_v9 }
  0x18   : > { %676 = vmatprep.subr.bf16.mxu0 %v759_v10  ;;  %729 = vmatprep.subr.bf16.mxu1 %v759_v10 }
  0x1b   : > { %677 = vmatpush3.bf16.msra.mxu0 %v760_v13  ;;  %737 = vmatpush3.bf16.msra.mxu1 %v760_v13 }
  0x1c   : > { %678 = vmatprep.subr.bf16.mxu0 %v761_v14  ;;  %730 = vmatprep.subr.bf16.mxu1 %v761_v14 }
  0x1f   : > { %679 = vmatpush3.bf16.msra.mxu0 %v762_v15  ;;  %738 = vmatpush3.bf16.msra.mxu1 %v762_v15 }
  0x20   : > { %680 = vmatprep.subr.bf16.mxu0 %v763_v16  ;;  %731 = vmatprep.subr.bf16.mxu1 %v763_v16 }
  0x23   : > { %681 = vmatpush3.bf16.msra.mxu0 %v764_v17  ;;  %739 = vmatpush3.bf16.msra.mxu1 %v764_v17 }
  0x24   : > { %712 = vmatprep.subr.bf16.mxu1 %v771_v18 }
  0x26   : > { %451 = vmatmul.mubr.bf16.vlgmr.msra.gmra.mrb[0].mxu0 %v765_v19  ;;  %475 = vmatmul.mubr.bf16.vlgmr.msra.gmra.mrb[0].mxu1 %v768_v20 }
  0x27   : > { %713 = vmatpush3.bf16.msra.mxu1 %v771_v18  ;;  %458 = vmatprep.mubr.bf16.mxu0 %v773_v21 }
  0x28   : > { %714 = vmatprep.subr.bf16.mxu1 %v772_v22  ;;  %716 = vmatprep.mubr.msk.bf16.mxu1 %vm405_vm0, %v775_v23 }
  0x2b   : > { %715 = vmatpush3.bf16.msra.mxu1 %v772_v22 }
  0x2e   : > { %459 = vmatmul.mubr.bf16.gmra.mrb[4].mxu0 %v776_v24  ;;  %717 = vmatmul.mubr.msk.bf16.vlgmr.msra.gmra.mrb[4].mxu1 %vm405_vm0, %v777_v25 }
  0x2f   : > { %466 = vmatprep.mubr.bf16.mxu0 %v778_v26  ;;  %720 = vmatprep.mubr.msk.bf16.mxu1 %vm405_vm0, %v780_v27 }
  0x36   : > { %467 = vmatmul.mubr.bf16.gmra.mrb[8].mxu0 %v781_v28  ;;  %721 = vmatmul.mubr.msk.bf16.gmra.mrb[8].mxu1 %vm405_vm0, %v782_v29 }
  0xf9   : > { %v682_v30 = vpop.f32.mrb[0].mxu0  ;;  %v700_v31 = vpop.f32.mrb[0].mxu1 }
  0xfa   : > { %v683_v32 = vpop.f32.mrb[1].mxu0  ;;  %v701_v33 = vpop.f32.mrb[1].mxu1 }
  0xfb   : > { %v684_v34 = vadd.f32 %v683_v32, %v682_v30  ;;  %v685_v35 = vpop.f32.mrb[2].mxu0  ;;  %v702_v36 = vadd.f32 %v701_v33, %v700_v31  ;;  %v703_v37 = vpop.f32.mrb[2].mxu1 }
  0xfc   : > { %v686_v38 = vpop.f32.mrb[3].mxu0  ;;  %v704_v39 = vpop.f32.mrb[3].mxu1 }
  0xfd   : > { %v687_v40 = vadd.f32 %v686_v38, %v685_v35  ;;  %v705_v41 = vadd.f32 %v704_v39, %v703_v37  ;;  %v453_v45 = vadd.f32 %v684_v34, %v629_v42  ;;  %v477_v62 = vadd.f32 %v702_v36, %v629_v42 }
  0xff   : > { %v456_v52 = vadd.f32 %v687_v40, %v629_v42  ;;  %v480_v6 = vadd.f32 %v705_v41, %v629_v42 }
 0x101   : > { %v688_v43 = vpop.f32.mrb[4].mxu0  ;;  %v718_v44 = vpop.f32.mrb[4].mxu1 }
 0x102   : > { %v689_v46 = vpop.f32.mrb[5].mxu0  ;;  %v517_v47 = vpop.f32.mrb[5].mxu1 }
 0x103   : > { %v690_v48 = vadd.f32 %v689_v46, %v688_v43  ;;  %v518_v49 = vadd.f32 %v517_v47, %v453_v45  ;;  %v691_v50 = vpop.f32.mrb[6].mxu0  ;;  %v719_v51 = vpop.f32.mrb[6].mxu1 }
 0x104   : > { %v692_v53 = vpop.f32.mrb[7].mxu0  ;;  %v520_v54 = vpop.f32.mrb[7].mxu1 }
 0x105   : > { %v461_v55 = vadd.f32 %v690_v48, %v629_v42  ;;  %v548_v56 = vmax.f32 %v518_v49, 0.0  ;;  %v693_v57 = vadd.f32 %v692_v53, %v691_v50  ;;  %v521_v58 = vadd.f32 %v520_v54, %v456_v52 }
 0x107   : > { %v526_v59 = vadd.f32 %v718_v44, %v461_v55  ;;  %556 = vst [vmem:[%s904_s8] sm:$0xff] %v548_v56  ;;  %v464_v60 = vadd.f32 %v693_v57, %v629_v42  ;;  %v549_v61 = vmax.f32 %v521_v58, 0.0 }
 0x109   : > { %v550_v63 = vmax.f32 %v526_v59, 0.0  ;;  %v529_v0 = vadd.f32 %v719_v51, %v464_v60  ;;  %557 = vst [vmem:[%s904_s8 + $0x8] sm:$0xff] %v549_v61  ;;  %v694_v1 = vpop.f32.mrb[8].mxu0  ;;  %v722_v2 = vpop.f32.mrb[8].mxu1 }
 0x10a   : > { %v542_v3 = vadd.f32 %v722_v2, %v477_v62  ;;  %v695_v4 = vpop.f32.mrb[9].mxu0  ;;  %v533_v5 = vpop.f32.mrb[9].mxu1 }
 0x10b   : > { %558 = vst [vmem:[%s904_s8 + $0x10] sm:$0xff] %v550_v63  ;;  %v551_v7 = vmax.f32 %v529_v0, 0.0  ;;  %v696_v8 = vadd.f32 %v695_v4, %v694_v1  ;;  %v697_v9 = vpop.f32.mrb[10].mxu0  ;;  %v723_v10 = vpop.f32.mrb[10].mxu1 }
 0x10c   : > { %v554_v11 = vmax.f32 %v542_v3, 0.0  ;;  %v545_v12 = vadd.f32 %v723_v10, %v480_v6  ;;  %v698_v13 = vpop.f32.mrb[11].mxu0  ;;  %v536_v14 = vpop.f32.mrb[11].mxu1 }
 0x10d   : > { %559 = vst [vmem:[%s904_s8 + $0x18] sm:$0xff] %v551_v7  ;;  %v469_v15 = vadd.f32 %v696_v8, %v629_v42  ;;  %v699_v16 = vadd.f32 %v698_v13, %v697_v9 }
 0x10e   : > { %562 = vst [vmem:[%s904_s8 + $0x30] sm:$0xff] %v554_v11  ;;  %v555_v17 = vmax.f32 %v545_v12, 0.0 }
 0x10f   : > { %v534_v18 = vadd.f32 %v533_v5, %v469_v15  ;;  %v472_v19 = vadd.f32 %v699_v16, %v629_v42 }
 0x110   : > { %563 = vst [vmem:[%s904_s8 + $0x38] sm:$0xff] %v555_v17 }
 0x111   : > { %v552_v20 = vmax.f32 %v534_v18, 0.0  ;;  %v537_v21 = vadd.f32 %v536_v14, %v472_v19 }
 0x113   : > { %560 = vst [vmem:[%s904_s8 + $0x20] sm:$0xff] %v552_v20  ;;  %v553_v22 = vmax.f32 %v537_v21, 0.0 }
 0x115   : > { %561 = vst [vmem:[%s904_s8 + $0x28] sm:$0xff] %v553_v22 }
 0x116 PF: > { %s13_s12 = sadd.s32 1, %s789_s12  }
 0x117   : > { %p10_p4 = scmp.ge.s32.totalorder %s13_s12, 4  }
 0x119   :  { %12 = sbr.rel (!%p10_p4) target bundleno = 1 (0x1), region = 62 }

// kernel: complex_unet_forward.23
= control target key start
LH: loop header
LB: loop body
LE: loop exit
PB: predicated region body
PF: predicated region fallthrough
CT: control target
= control target key end

     0   :  { %s947_s12 = smov 0   ;;  %s1119_s0 = inlined_call_operand.vmem [shape: bf16[512,144], index: 0, kind: input, shape index: {}]   ;;  %s1120_s1 = inlined_call_operand.vmem [shape: bf16[144,128], index: 1, kind: input, shape index: {}]   ;;  %s1121_s2 = inlined_call_operand.vmem [shape: f32[1,128], index: 2, kind: input, shape index: {}]   ;;  %s1122_s3 = inlined_call_operand.vmem [shape: f32[512,128], index: 3, kind: output, shape index: {}]  }
   0x1 LB: > { %s763_s13 = sadd.s32 4294967295, %s924_s12   ;;  %p767_p0 = scmp.ge.s32.totalorder %s924_s12, 1  ;;  %s924_s12 = sphi %s947_s12, %s13_s12  }
   0x2   : > { %p139_p1 = scmp.lt.s32.totalorder %s924_s12, 3 }
   0x4   : > { %p140_p2 = pnand %p767_p0, %p139_p1 }
   0x5   : > { %v861_v0 = vld [vmem:[%s1120_s1] sm:$0xff] (!%p140_p2)   ;;  %v926_v1 = vmov (!%p140_p2), 0   ;;  %s768_s16 = sshll.u32 (!%p140_p2), %s763_s13, 5  ;;  %v862_v2 = vld [vmem:[%s1120_s1 + $0x8] sm:$0xff] (!%p140_p2)   ;;  %v863_v3 = vld [vmem:[%s1120_s1 + $0x10] sm:$0xff] (!%p140_p2)   ;;  %vm433_vm0 = vcmask (!%p140_p2), 130048  }
   0x6   : > { %143 = sbr.rel (%p140_p2) target bundleno = 317 (0x13d), region = 32  ;;  %482 = vmatprep.subr.bf16.mxu0 (!%p140_p2), %v926_v1  ;;  %834 = vmatprep.subr.bf16.mxu1 (!%p140_p2), %v926_v1  ;;  %p165_p3 = scmp.lt.s32.totalorder (!%p140_p2), %s768_s16, 63  ;;  %v864_v4 = vld [vmem:[%s1120_s1 + $0x18] sm:$0xff] (!%p140_p2)   ;;  %v865_v7 = vld [vmem:[%s1120_s1 + $0x20] sm:$0xff] (!%p140_p2)   ;;  %v866_v8 = vld [vmem:[%s1120_s1 + $0x28] sm:$0xff] (!%p140_p2)  }
   0x7   : > { %483 = vmatpush1.bf16.msra.mxu0 (!%p140_p2), %v861_v0  ;;  %843 = vmatpush1.bf16.msra.mxu1 (!%p140_p2), %v861_v0  ;;  %v867_v9 = vld [vmem:[%s1120_s1 + $0x30] sm:$0xff] (!%p140_p2)   ;;  %v868_v10 = vld [vmem:[%s1120_s1 + $0x38] sm:$0xff] (!%p140_p2)   ;;  %v869_v11 = vld [vmem:[%s1120_s1 + $0x40] sm:$0xff] (!%p140_p2)  }
   0x8   : > { %484 = vmatprep.subr.bf16.mxu0 (!%p140_p2), %v926_v1  ;;  %835 = vmatprep.subr.bf16.mxu1 (!%p140_p2), %v926_v1  ;;  %v1043_v42 = vld [vmem:[%s1121_s2] ss:$0 sm:$0xff] (!%p140_p2) }
   0xb   : > { %485 = vmatpush1.bf16.msra.mxu0 (!%p140_p2), %v862_v2  ;;  %844 = vmatpush1.bf16.msra.mxu1 (!%p140_p2), %v862_v2 }
   0xc   : > { %486 = vmatprep.subr.bf16.mxu0 (!%p140_p2), %v926_v1  ;;  %836 = vmatprep.subr.bf16.mxu1 (!%p140_p2), %v926_v1 }
   0xd   : > { %s1124_s16 = smov (!%p165_p3, %s768_s16), 63 }
   0xe   : > { %s833_s21 = sshll.u32 %s1124_s16, 3 }
   0xf   : > { %s972_s24 = scalar_lea.vmem %s1119_s0, %s833_s21  ;;  %487 = vmatpush1.bf16.msra.mxu0 %v863_v3  ;;  %845 = vmatpush1.bf16.msra.mxu1 %v863_v3  ;;  %s1052_s15 = scalar_lea.vmem %s1122_s3, %s833_s21 }
  0x10   : > { %v872_v5 = vld [vmem:[%s972_s24 + $0x4] ss:$8 sps:$4 sm:$0xff]   ;;  %488 = vmatprep.subr.bf16.mxu0 %v926_v1  ;;  %837 = vmatprep.subr.bf16.mxu1 %v926_v1  ;;  %v870_v12 = vld [vmem:[%s972_s24] ss:$8 sps:$4 sm:$0xff]   ;;  %v876_v14 = vld [vmem:[%s972_s24 + $0x14] ss:$8 sps:$4 sm:$0xff]  }
  0x11   : > { %v875_v6 = vld [vmem:[%s972_s24 + $0x84] ss:$8 sps:$4 sm:$0xff]   ;;  %815 = vmatprep.mubr.msk.bf16.mxu0 %vm433_vm0, %v872_v5  ;;  %v873_v13 = vld [vmem:[%s972_s24 + $0x80] ss:$8 sps:$4 sm:$0xff]   ;;  %v878_v15 = vld [vmem:[%s972_s24 + $0x94] ss:$8 sps:$4 sm:$0xff]  }
  0x12   : > { %823 = vmatprep.mubr.msk.bf16.mxu1 %vm433_vm0, %v875_v6  ;;  %v880_v16 = vld [vmem:[%s972_s24 + $0x10] ss:$8 sps:$4 sm:$0xff]   ;;  %v882_v18 = vld [vmem:[%s972_s24 + $0x24] ss:$8 sps:$4 sm:$0xff]   ;;  %v886_v20 = vld [vmem:[%s972_s24 + $0x20] ss:$8 sps:$4 sm:$0xff]  }
  0x13   : > { %489 = vmatpush1.bf16.msra.mxu0 %v864_v4  ;;  %846 = vmatpush1.bf16.msra.mxu1 %v864_v4  ;;  %v881_v17 = vld [vmem:[%s972_s24 + $0x90] ss:$8 sps:$4 sm:$0xff]   ;;  %v884_v19 = vld [vmem:[%s972_s24 + $0xa4] ss:$8 sps:$4 sm:$0xff]   ;;  %v887_v21 = vld [vmem:[%s972_s24 + $0xa0] ss:$8 sps:$4 sm:$0xff]  }
  0x14   : > { %490 = vmatprep.subr.bf16.mxu0 %v926_v1  ;;  %838 = vmatprep.subr.bf16.mxu1 %v926_v1  ;;  %v888_v22 = vld [vmem:[%s972_s24 + $0x34] ss:$8 sps:$4 sm:$0xff]   ;;  %v892_v24 = vld [vmem:[%s972_s24 + $0x30] ss:$8 sps:$4 sm:$0xff]   ;;  %v894_v26 = vld [vmem:[%s972_s24 + $0x44] ss:$8 sps:$4 sm:$0xff]  }
  0x15   : > { %v890_v23 = vld [vmem:[%s972_s24 + $0xb4] ss:$8 sps:$4 sm:$0xff]   ;;  %v893_v25 = vld [vmem:[%s972_s24 + $0xb0] ss:$8 sps:$4 sm:$0xff]   ;;  %v896_v27 = vld [vmem:[%s972_s24 + $0xc4] ss:$8 sps:$4 sm:$0xff]  }
  0x16   : > { %v898_v28 = vld [vmem:[%s972_s24 + $0x40] ss:$8 sps:$4 sm:$0xff]   ;;  %v900_v30 = vld [vmem:[%s972_s24 + $0x54] ss:$8 sps:$4 sm:$0xff]   ;;  %v904_v32 = vld [vmem:[%s972_s24 + $0x50] ss:$8 sps:$4 sm:$0xff]  }
  0x17   : > { %491 = vmatpush1.bf16.msra.mxu0 %v865_v7  ;;  %847 = vmatpush1.bf16.msra.mxu1 %v865_v7  ;;  %v899_v29 = vld [vmem:[%s972_s24 + $0xc0] ss:$8 sps:$4 sm:$0xff]   ;;  %v902_v31 = vld [vmem:[%s972_s24 + $0xd4] ss:$8 sps:$4 sm:$0xff]   ;;  %v905_v33 = vld [vmem:[%s972_s24 + $0xd0] ss:$8 sps:$4 sm:$0xff]  }
  0x18   : > { %492 = vmatprep.subr.bf16.mxu0 %v926_v1  ;;  %839 = vmatprep.subr.bf16.mxu1 %v926_v1  ;;  %v906_v34 = vld [vmem:[%s972_s24 + $0x64] ss:$8 sps:$4 sm:$0xff]   ;;  %v910_v36 = vld [vmem:[%s972_s24 + $0x60] ss:$8 sps:$4 sm:$0xff]   ;;  %v912_v38 = vld [vmem:[%s972_s24 + $0x74] ss:$8 sps:$4 sm:$0xff]  }
  0x19   : > { %v908_v35 = vld [vmem:[%s972_s24 + $0xe4] ss:$8 sps:$4 sm:$0xff]   ;;  %v911_v37 = vld [vmem:[%s972_s24 + $0xe0] ss:$8 sps:$4 sm:$0xff]   ;;  %v914_v39 = vld [vmem:[%s972_s24 + $0xf4] ss:$8 sps:$4 sm:$0xff]  }
  0x1a   : > { %v916_v40 = vld [vmem:[%s972_s24 + $0x70] ss:$8 sps:$4 sm:$0xff]  }
  0x1b   : > { %493 = vmatpush1.bf16.msra.mxu0 %v866_v8  ;;  %848 = vmatpush1.bf16.msra.mxu1 %v866_v8  ;;  %v917_v41 = vld [vmem:[%s972_s24 + $0xf0] ss:$8 sps:$4 sm:$0xff]  }
  0x1c   : > { %494 = vmatprep.subr.bf16.mxu0 %v926_v1  ;;  %840 = vmatprep.subr.bf16.mxu1 %v926_v1 }
  0x1f   : > { %495 = vmatpush1.bf16.msra.mxu0 %v867_v9  ;;  %849 = vmatpush1.bf16.msra.mxu1 %v867_v9 }
  0x20   : > { %496 = vmatprep.subr.bf16.mxu0 %v926_v1  ;;  %841 = vmatprep.subr.bf16.mxu1 %v926_v1 }
  0x23   : > { %497 = vmatpush1.bf16.msra.mxu0 %v868_v10  ;;  %850 = vmatpush1.bf16.msra.mxu1 %v868_v10 }
  0x24   : > { %498 = vmatprep.subr.bf16.mxu0 %v926_v1  ;;  %842 = vmatprep.subr.bf16.mxu1 %v926_v1 }
  0x27   : > { %499 = vmatpush1.bf16.msra.mxu0 %v869_v11  ;;  %851 = vmatpush1.bf16.msra.mxu1 %v869_v11 }
  0x2a   : > { %515 = vmatmul.mubr.bf16.vlgmr.msra.gmra.mrb[0].mxu0 %v870_v12  ;;  %579 = vmatmul.mubr.bf16.vlgmr.msra.gmra.mrb[0].mxu1 %v873_v13 }
  0x2b   : > { %816 = vmatprep.mubr.msk.bf16.mxu0 %vm433_vm0, %v876_v14  ;;  %824 = vmatprep.mubr.msk.bf16.mxu1 %vm433_vm0, %v878_v15 }
  0x32   : > { %523 = vmatmul.mubr.bf16.gmra.mrb[4].mxu0 %v880_v16  ;;  %587 = vmatmul.mubr.bf16.gmra.mrb[4].mxu1 %v881_v17 }
  0x33   : > { %817 = vmatprep.mubr.msk.bf16.mxu0 %vm433_vm0, %v882_v18  ;;  %825 = vmatprep.mubr.msk.bf16.mxu1 %vm433_vm0, %v884_v19 }
  0x3a   : > { %531 = vmatmul.mubr.bf16.gmra.mrb[8].mxu0 %v886_v20  ;;  %595 = vmatmul.mubr.bf16.gmra.mrb[8].mxu1 %v887_v21 }
  0x3b   : > { %818 = vmatprep.mubr.msk.bf16.mxu0 %vm433_vm0, %v888_v22  ;;  %826 = vmatprep.mubr.msk.bf16.mxu1 %vm433_vm0, %v890_v23 }
  0x42   : > { %539 = vmatmul.mubr.bf16.gmra.mrb[12].mxu0 %v892_v24  ;;  %603 = vmatmul.mubr.bf16.gmra.mrb[12].mxu1 %v893_v25 }
  0x43   : > { %819 = vmatprep.mubr.msk.bf16.mxu0 %vm433_vm0, %v894_v26  ;;  %827 = vmatprep.mubr.msk.bf16.mxu1 %vm433_vm0, %v896_v27 }
  0x4a   : > { %547 = vmatmul.mubr.bf16.gmra.mrb[16].mxu0 %v898_v28  ;;  %611 = vmatmul.mubr.bf16.gmra.mrb[16].mxu1 %v899_v29 }
  0x4b   : > { %820 = vmatprep.mubr.msk.bf16.mxu0 %vm433_vm0, %v900_v30  ;;  %828 = vmatprep.mubr.msk.bf16.mxu1 %vm433_vm0, %v902_v31 }
  0x52   : > { %555 = vmatmul.mubr.bf16.gmra.mrb[20].mxu0 %v904_v32  ;;  %619 = vmatmul.mubr.bf16.gmra.mrb[20].mxu1 %v905_v33 }
  0x53   : > { %821 = vmatprep.mubr.msk.bf16.mxu0 %vm433_vm0, %v906_v34  ;;  %829 = vmatprep.mubr.msk.bf16.mxu1 %vm433_vm0, %v908_v35 }
  0x5a   : > { %563 = vmatmul.mubr.bf16.gmra.mrb[24].mxu0 %v910_v36  ;;  %627 = vmatmul.mubr.bf16.gmra.mrb[24].mxu1 %v911_v37 }
  0x5b   : > { %822 = vmatprep.mubr.msk.bf16.mxu0 %vm433_vm0, %v912_v38  ;;  %830 = vmatprep.mubr.msk.bf16.mxu1 %vm433_vm0, %v914_v39 }
  0x62   : > { %571 = vmatmul.mubr.bf16.gmra.mrb[28].mxu0 %v916_v40  ;;  %635 = vmatmul.mubr.bf16.gmra.mrb[28].mxu1 %v917_v41 }
  0xfd   : > { %v516_v43 = vpop.f32.mrb[0].mxu0  ;;  %v580_v44 = vpop.f32.mrb[0].mxu1 }
  0xfe   : > { %v517_v45 = vadd.f32 %v1043_v42, %v516_v43  ;;  %v581_v46 = vadd.f32 %v1043_v42, %v580_v44  ;;  %v518_v47 = vpop.f32.mrb[1].mxu0  ;;  %v582_v48 = vpop.f32.mrb[1].mxu1 }
  0xff   : > { %v519_v49 = vpop.f32.mrb[2].mxu0  ;;  %v583_v50 = vpop.f32.mrb[2].mxu1 }
 0x100   : > { %v643_v51 = vmax.f32 %v517_v45, 0.0  ;;  %v659_v52 = vmax.f32 %v581_v46, 0.0  ;;  %v520_v53 = vadd.f32 %v1043_v42, %v519_v49  ;;  %v584_v54 = vadd.f32 %v1043_v42, %v583_v50  ;;  %v521_v55 = vpop.f32.mrb[3].mxu0  ;;  %v585_v56 = vpop.f32.mrb[3].mxu1 }
 0x102   : > { %675 = vst [vmem:[%s1052_s15] sm:$0xff] %v643_v51  ;;  %691 = vst [vmem:[%s1052_s15 + $0x80] sm:$0xff] %v659_v52  ;;  %v644_v57 = vmax.f32 %v520_v53, 0.0  ;;  %v660_v58 = vmax.f32 %v584_v54, 0.0 }
 0x104   : > { %676 = vst [vmem:[%s1052_s15 + $0x8] sm:$0xff] %v644_v57  ;;  %692 = vst [vmem:[%s1052_s15 + $0x88] sm:$0xff] %v660_v58 }
 0x105   : > { %v524_v59 = vpop.f32.mrb[4].mxu0  ;;  %v588_v60 = vpop.f32.mrb[4].mxu1 }
 0x106   : > { %v525_v61 = vadd.f32 %v1043_v42, %v524_v59  ;;  %v589_v62 = vadd.f32 %v1043_v42, %v588_v60  ;;  %v526_v63 = vpop.f32.mrb[5].mxu0  ;;  %v590_v0 = vpop.f32.mrb[5].mxu1 }
 0x107   : > { %v527_v1 = vpop.f32.mrb[6].mxu0  ;;  %v591_v2 = vpop.f32.mrb[6].mxu1 }
 0x108   : > { %v645_v3 = vmax.f32 %v525_v61, 0.0  ;;  %v661_v4 = vmax.f32 %v589_v62, 0.0  ;;  %v528_v5 = vadd.f32 %v1043_v42, %v527_v1  ;;  %v592_v6 = vadd.f32 %v1043_v42, %v591_v2  ;;  %v529_v7 = vpop.f32.mrb[7].mxu0  ;;  %v593_v8 = vpop.f32.mrb[7].mxu1 }
 0x10a   : > { %677 = vst [vmem:[%s1052_s15 + $0x10] sm:$0xff] %v645_v3  ;;  %693 = vst [vmem:[%s1052_s15 + $0x90] sm:$0xff] %v661_v4  ;;  %v646_v9 = vmax.f32 %v528_v5, 0.0  ;;  %v662_v10 = vmax.f32 %v592_v6, 0.0 }
 0x10c   : > { %678 = vst [vmem:[%s1052_s15 + $0x18] sm:$0xff] %v646_v9  ;;  %694 = vst [vmem:[%s1052_s15 + $0x98] sm:$0xff] %v662_v10 }
 0x10d   : > { %v532_v11 = vpop.f32.mrb[8].mxu0  ;;  %v596_v12 = vpop.f32.mrb[8].mxu1 }
 0x10e   : > { %v533_v13 = vadd.f32 %v1043_v42, %v532_v11  ;;  %v597_v14 = vadd.f32 %v1043_v42, %v596_v12  ;;  %v534_v15 = vpop.f32.mrb[9].mxu0  ;;  %v598_v16 = vpop.f32.mrb[9].mxu1 }
 0x10f   : > { %v535_v17 = vpop.f32.mrb[10].mxu0  ;;  %v599_v18 = vpop.f32.mrb[10].mxu1 }
 0x110   : > { %v647_v19 = vmax.f32 %v533_v13, 0.0  ;;  %v663_v20 = vmax.f32 %v597_v14, 0.0  ;;  %v536_v21 = vadd.f32 %v1043_v42, %v535_v17  ;;  %v600_v22 = vadd.f32 %v1043_v42, %v599_v18  ;;  %v537_v23 = vpop.f32.mrb[11].mxu0  ;;  %v601_v24 = vpop.f32.mrb[11].mxu1 }
 0x112   : > { %679 = vst [vmem:[%s1052_s15 + $0x20] sm:$0xff] %v647_v19  ;;  %695 = vst [vmem:[%s1052_s15 + $0xa0] sm:$0xff] %v663_v20  ;;  %v648_v25 = vmax.f32 %v536_v21, 0.0  ;;  %v664_v26 = vmax.f32 %v600_v22, 0.0 }
 0x114   : > { %680 = vst [vmem:[%s1052_s15 + $0x28] sm:$0xff] %v648_v25  ;;  %696 = vst [vmem:[%s1052_s15 + $0xa8] sm:$0xff] %v664_v26 }
 0x115   : > { %v540_v27 = vpop.f32.mrb[12].mxu0  ;;  %v604_v28 = vpop.f32.mrb[12].mxu1 }
 0x116   : > { %v541_v29 = vadd.f32 %v1043_v42, %v540_v27  ;;  %v605_v30 = vadd.f32 %v1043_v42, %v604_v28  ;;  %v542_v31 = vpop.f32.mrb[13].mxu0  ;;  %v606_v32 = vpop.f32.mrb[13].mxu1 }
 0x117   : > { %v543_v33 = vpop.f32.mrb[14].mxu0  ;;  %v607_v34 = vpop.f32.mrb[14].mxu1 }
 0x118   : > { %v649_v35 = vmax.f32 %v541_v29, 0.0  ;;  %v665_v36 = vmax.f32 %v605_v30, 0.0  ;;  %v544_v37 = vadd.f32 %v1043_v42, %v543_v33  ;;  %v608_v38 = vadd.f32 %v1043_v42, %v607_v34  ;;  %v545_v39 = vpop.f32.mrb[15].mxu0  ;;  %v609_v40 = vpop.f32.mrb[15].mxu1 }
 0x11a   : > { %681 = vst [vmem:[%s1052_s15 + $0x30] sm:$0xff] %v649_v35  ;;  %697 = vst [vmem:[%s1052_s15 + $0xb0] sm:$0xff] %v665_v36  ;;  %v650_v41 = vmax.f32 %v544_v37, 0.0  ;;  %v666_v43 = vmax.f32 %v608_v38, 0.0 }
 0x11c   : > { %682 = vst [vmem:[%s1052_s15 + $0x38] sm:$0xff] %v650_v41  ;;  %698 = vst [vmem:[%s1052_s15 + $0xb8] sm:$0xff] %v666_v43 }
 0x11d   : > { %v548_v44 = vpop.f32.mrb[16].mxu0  ;;  %v612_v45 = vpop.f32.mrb[16].mxu1 }
 0x11e   : > { %v549_v46 = vadd.f32 %v1043_v42, %v548_v44  ;;  %v613_v47 = vadd.f32 %v1043_v42, %v612_v45  ;;  %v550_v48 = vpop.f32.mrb[17].mxu0  ;;  %v614_v49 = vpop.f32.mrb[17].mxu1 }
 0x11f   : > { %v551_v50 = vpop.f32.mrb[18].mxu0  ;;  %v615_v51 = vpop.f32.mrb[18].mxu1 }
 0x120   : > { %v651_v52 = vmax.f32 %v549_v46, 0.0  ;;  %v667_v53 = vmax.f32 %v613_v47, 0.0  ;;  %v552_v54 = vadd.f32 %v1043_v42, %v551_v50  ;;  %v616_v55 = vadd.f32 %v1043_v42, %v615_v51  ;;  %v553_v56 = vpop.f32.mrb[19].mxu0  ;;  %v617_v57 = vpop.f32.mrb[19].mxu1 }
 0x122   : > { %683 = vst [vmem:[%s1052_s15 + $0x40] sm:$0xff] %v651_v52  ;;  %699 = vst [vmem:[%s1052_s15 + $0xc0] sm:$0xff] %v667_v53  ;;  %v652_v58 = vmax.f32 %v552_v54, 0.0  ;;  %v668_v59 = vmax.f32 %v616_v55, 0.0 }
 0x124   : > { %684 = vst [vmem:[%s1052_s15 + $0x48] sm:$0xff] %v652_v58  ;;  %700 = vst [vmem:[%s1052_s15 + $0xc8] sm:$0xff] %v668_v59 }
 0x125   : > { %v556_v60 = vpop.f32.mrb[20].mxu0  ;;  %v620_v61 = vpop.f32.mrb[20].mxu1 }
 0x126   : > { %v557_v62 = vadd.f32 %v1043_v42, %v556_v60  ;;  %v621_v63 = vadd.f32 %v1043_v42, %v620_v61  ;;  %v558_v0 = vpop.f32.mrb[21].mxu0  ;;  %v622_v1 = vpop.f32.mrb[21].mxu1 }
 0x127   : > { %v559_v2 = vpop.f32.mrb[22].mxu0  ;;  %v623_v3 = vpop.f32.mrb[22].mxu1 }
 0x128   : > { %v653_v4 = vmax.f32 %v557_v62, 0.0  ;;  %v669_v5 = vmax.f32 %v621_v63, 0.0  ;;  %v560_v6 = vadd.f32 %v1043_v42, %v559_v2  ;;  %v624_v7 = vadd.f32 %v1043_v42, %v623_v3  ;;  %v561_v8 = vpop.f32.mrb[23].mxu0  ;;  %v625_v9 = vpop.f32.mrb[23].mxu1 }
 0x12a   : > { %685 = vst [vmem:[%s1052_s15 + $0x50] sm:$0xff] %v653_v4  ;;  %701 = vst [vmem:[%s1052_s15 + $0xd0] sm:$0xff] %v669_v5  ;;  %v654_v10 = vmax.f32 %v560_v6, 0.0  ;;  %v670_v11 = vmax.f32 %v624_v7, 0.0 }
 0x12c   : > { %686 = vst [vmem:[%s1052_s15 + $0x58] sm:$0xff] %v654_v10  ;;  %702 = vst [vmem:[%s1052_s15 + $0xd8] sm:$0xff] %v670_v11 }
 0x12d   : > { %v564_v12 = vpop.f32.mrb[24].mxu0  ;;  %v628_v13 = vpop.f32.mrb[24].mxu1 }
 0x12e   : > { %v565_v14 = vadd.f32 %v1043_v42, %v564_v12  ;;  %v629_v15 = vadd.f32 %v1043_v42, %v628_v13  ;;  %v566_v16 = vpop.f32.mrb[25].mxu0  ;;  %v630_v17 = vpop.f32.mrb[25].mxu1 }
 0x12f   : > { %v567_v18 = vpop.f32.mrb[26].mxu0  ;;  %v631_v19 = vpop.f32.mrb[26].mxu1 }
 0x130   : > { %v655_v20 = vmax.f32 %v565_v14, 0.0  ;;  %v671_v21 = vmax.f32 %v629_v15, 0.0  ;;  %v568_v22 = vadd.f32 %v1043_v42, %v567_v18  ;;  %v632_v23 = vadd.f32 %v1043_v42, %v631_v19  ;;  %v569_v24 = vpop.f32.mrb[27].mxu0  ;;  %v633_v25 = vpop.f32.mrb[27].mxu1 }
 0x132   : > { %687 = vst [vmem:[%s1052_s15 + $0x60] sm:$0xff] %v655_v20  ;;  %703 = vst [vmem:[%s1052_s15 + $0xe0] sm:$0xff] %v671_v21  ;;  %v656_v26 = vmax.f32 %v568_v22, 0.0  ;;  %v672_v27 = vmax.f32 %v632_v23, 0.0 }
 0x134   : > { %688 = vst [vmem:[%s1052_s15 + $0x68] sm:$0xff] %v656_v26  ;;  %704 = vst [vmem:[%s1052_s15 + $0xe8] sm:$0xff] %v672_v27 }
 0x135   : > { %v572_v28 = vpop.f32.mrb[28].mxu0  ;;  %v636_v29 = vpop.f32.mrb[28].mxu1 }
 0x136   : > { %v573_v30 = vadd.f32 %v1043_v42, %v572_v28  ;;  %v637_v31 = vadd.f32 %v1043_v42, %v636_v29  ;;  %v574_v32 = vpop.f32.mrb[29].mxu0  ;;  %v638_v33 = vpop.f32.mrb[29].mxu1 }
 0x137   : > { %v575_v34 = vpop.f32.mrb[30].mxu0  ;;  %v639_v35 = vpop.f32.mrb[30].mxu1 }
 0x138   : > { %v657_v36 = vmax.f32 %v573_v30, 0.0  ;;  %v673_v37 = vmax.f32 %v637_v31, 0.0  ;;  %v576_v38 = vadd.f32 %v1043_v42, %v575_v34  ;;  %v640_v39 = vadd.f32 %v1043_v42, %v639_v35  ;;  %v577_v40 = vpop.f32.mrb[31].mxu0  ;;  %v641_v41 = vpop.f32.mrb[31].mxu1 }
 0x13a   : > { %689 = vst [vmem:[%s1052_s15 + $0x70] sm:$0xff] %v657_v36  ;;  %705 = vst [vmem:[%s1052_s15 + $0xf0] sm:$0xff] %v673_v37  ;;  %v658_v43 = vmax.f32 %v576_v38, 0.0  ;;  %v674_v44 = vmax.f32 %v640_v39, 0.0 }
 0x13c   : > { %690 = vst [vmem:[%s1052_s15 + $0x78] sm:$0xff] %v658_v43  ;;  %706 = vst [vmem:[%s1052_s15 + $0xf8] sm:$0xff] %v674_v44 }
 0x13d PF: > { %s13_s12 = sadd.s32 1, %s924_s12  }
 0x13e   : > { %p10_p4 = scmp.ge.s32.totalorder %s13_s12, 4  }
 0x140   :  { %12 = sbr.rel (!%p10_p4) target bundleno = 1 (0x1), region = 62 }

// kernel: complex_unet_forward.25
= control target key start
LH: loop header
LB: loop body
LE: loop exit
PB: predicated region body
PF: predicated region fallthrough
CT: control target
= control target key end

     0   :  { %s748_s12 = smov 0   ;;  %s877_s0 = inlined_call_operand.vmem [shape: bf16[512,8], index: 0, kind: input, shape index: {}]   ;;  %s878_s1 = inlined_call_operand.vmem [shape: bf16[8,128], index: 1, kind: input, shape index: {}]   ;;  %s879_s2 = inlined_call_operand.vmem [shape: f32[1,128], index: 2, kind: input, shape index: {}]   ;;  %s880_s3 = inlined_call_operand.vmem [shape: f32[512,128], index: 3, kind: output, shape index: {}]  }
   0x1 LB: > { %s597_s13 = sadd.s32 4294967295, %s726_s12   ;;  %p601_p0 = scmp.ge.s32.totalorder %s726_s12, 1  ;;  %s726_s12 = sphi %s748_s12, %s13_s12  }
   0x2   : > { %p138_p1 = scmp.lt.s32.totalorder %s726_s12, 3 }
   0x4   : > { %p139_p2 = pnand %p601_p0, %p138_p1 }
   0x5   : > { %v207_v0 = vld [vmem:[%s878_s1] sm:$0xf] (!%p139_p2)  ;;  %vm344_vm0 = vcmask (!%p139_p2), 1043456   ;;  %s602_s16 = sshll.u32 (!%p139_p2), %s597_s13, 5  ;;  %vm295_vm1 = vcmask (!%p139_p2), 64512  }
   0x6   : > { %142 = sbr.rel (%p139_p2) target bundleno = 261 (0x105), region = 32  ;;  %694 = vmatprep.subr.msk.bf16.mxu0 (!%p139_p2), %vm344_vm0, %v207_v0  ;;  %695 = vmatprep.subr.msk.bf16.mxu1 (!%p139_p2), %vm344_vm0, %v207_v0  ;;  %v346_v1 = vsel (!%p139_p2), %vm344_vm0, %v207_v0, 0  ;;  %p163_p3 = scmp.lt.s32.totalorder (!%p139_p2), %s602_s16, 63  ;;  %v803_v18 = vld [vmem:[%s879_s2] ss:$0 sm:$0xff] (!%p139_p2) }
   0x7   : > { %659 = vmatpush3.bf16.msra.mxu0 (!%p139_p2), %v346_v1  ;;  %693 = vmatpush3.bf16.msra.mxu1 (!%p139_p2), %v346_v1 }
   0xd   : > { %s882_s16 = smov (!%p163_p3, %s602_s16), 63 }
   0xe   : > { %s603_s17 = sshll.u32 %s882_s16, 2  ;;  %s605_s21 = sshll.u32 %s882_s16, 3 }
   0xf   : > { %s765_s20 = scalar_lea.vmem %s877_s0, %s603_s17  ;;  %s808_s26 = scalar_lea.vmem %s880_s3, %s605_s21 }
  0x10   : > { %v704_v2 = vld [vmem:[%s765_s20] sm:$0xff]   ;;  %v706_v4 = vld [vmem:[%s765_s20 + $0x8] sm:$0xff]   ;;  %v708_v6 = vld [vmem:[%s765_s20 + $0x10] sm:$0xff]  }
  0x11   : > { %v705_v3 = vld [vmem:[%s765_s20 + $0x40] sm:$0xff]   ;;  %660 = vmatprep.mubr.msk.bf16.mxu0 %vm295_vm1, %v704_v2  ;;  %v707_v5 = vld [vmem:[%s765_s20 + $0x48] sm:$0xff]   ;;  %v709_v7 = vld [vmem:[%s765_s20 + $0x50] sm:$0xff]  }
  0x12   : > { %676 = vmatprep.mubr.msk.bf16.mxu1 %vm295_vm1, %v705_v3  ;;  %661 = vmatmul.mubr.msk.bf16.vlgmr.msra.gmra.mrb[0].mxu0 %vm295_vm1, %v706_v4  ;;  %v710_v8 = vld [vmem:[%s765_s20 + $0x18] sm:$0xff]   ;;  %v712_v10 = vld [vmem:[%s765_s20 + $0x20] sm:$0xff]   ;;  %v714_v12 = vld [vmem:[%s765_s20 + $0x28] sm:$0xff]  }
  0x13   : > { %677 = vmatmul.mubr.msk.bf16.vlgmr.msra.gmra.mrb[0].mxu1 %vm295_vm1, %v707_v5  ;;  %664 = vmatprep.mubr.msk.bf16.mxu0 %vm295_vm1, %v708_v6  ;;  %v711_v9 = vld [vmem:[%s765_s20 + $0x58] sm:$0xff]   ;;  %v713_v11 = vld [vmem:[%s765_s20 + $0x60] sm:$0xff]   ;;  %v715_v13 = vld [vmem:[%s765_s20 + $0x68] sm:$0xff]  }
  0x14   : > { %680 = vmatprep.mubr.msk.bf16.mxu1 %vm295_vm1, %v709_v7  ;;  %v716_v14 = vld [vmem:[%s765_s20 + $0x30] sm:$0xff]   ;;  %v718_v16 = vld [vmem:[%s765_s20 + $0x38] sm:$0xff]  }
  0x15   : > { %v717_v15 = vld [vmem:[%s765_s20 + $0x70] sm:$0xff]   ;;  %v719_v17 = vld [vmem:[%s765_s20 + $0x78] sm:$0xff]  }
  0x1a   : > { %665 = vmatmul.mubr.msk.bf16.gmra.mrb[4].mxu0 %vm295_vm1, %v710_v8 }
  0x1b   : > { %681 = vmatmul.mubr.msk.bf16.gmra.mrb[4].mxu1 %vm295_vm1, %v711_v9  ;;  %668 = vmatprep.mubr.msk.bf16.mxu0 %vm295_vm1, %v712_v10 }
  0x1c   : > { %684 = vmatprep.mubr.msk.bf16.mxu1 %vm295_vm1, %v713_v11 }
  0x22   : > { %669 = vmatmul.mubr.msk.bf16.gmra.mrb[8].mxu0 %vm295_vm1, %v714_v12 }
  0x23   : > { %685 = vmatmul.mubr.msk.bf16.gmra.mrb[8].mxu1 %vm295_vm1, %v715_v13  ;;  %672 = vmatprep.mubr.msk.bf16.mxu0 %vm295_vm1, %v716_v14 }
  0x24   : > { %688 = vmatprep.mubr.msk.bf16.mxu1 %vm295_vm1, %v717_v15 }
  0x2a   : > { %673 = vmatmul.mubr.msk.bf16.gmra.mrb[12].mxu0 %vm295_vm1, %v718_v16 }
  0x2b   : > { %689 = vmatmul.mubr.msk.bf16.gmra.mrb[12].mxu1 %vm295_vm1, %v719_v17 }
  0xe5   : > { %v662_v19 = vpop.f32.mrb[0].mxu0 }
  0xe6   : > { %v391_v20 = vadd.f32 %v662_v19, %v803_v18  ;;  %v678_v21 = vpop.f32.mrb[0].mxu1  ;;  %v382_v22 = vpop.f32.mrb[1].mxu0 }
  0xe7   : > { %v455_v23 = vadd.f32 %v678_v21, %v803_v18  ;;  %v383_v24 = vadd.f32 %v803_v18, %v382_v22  ;;  %v446_v25 = vpop.f32.mrb[1].mxu1  ;;  %v663_v26 = vpop.f32.mrb[2].mxu0 }
  0xe8   : > { %511 = vst [vmem:[%s808_s26 + $0x10] sm:$0xff] %v391_v20  ;;  %v447_v27 = vadd.f32 %v803_v18, %v446_v25  ;;  %v394_v28 = vadd.f32 %v663_v26, %v803_v18  ;;  %v679_v29 = vpop.f32.mrb[2].mxu1  ;;  %v385_v30 = vpop.f32.mrb[3].mxu0 }
  0xe9   : > { %527 = vst [vmem:[%s808_s26 + $0x90] sm:$0xff] %v455_v23  ;;  %509 = vst [vmem:[%s808_s26] sm:$0xff] %v383_v24  ;;  %v458_v31 = vadd.f32 %v679_v29, %v803_v18  ;;  %v386_v32 = vadd.f32 %v803_v18, %v385_v30  ;;  %v449_v33 = vpop.f32.mrb[3].mxu1 }
  0xea   : > { %525 = vst [vmem:[%s808_s26 + $0x80] sm:$0xff] %v447_v27  ;;  %512 = vst [vmem:[%s808_s26 + $0x18] sm:$0xff] %v394_v28  ;;  %v450_v34 = vadd.f32 %v803_v18, %v449_v33 }
  0xeb   : > { %528 = vst [vmem:[%s808_s26 + $0x98] sm:$0xff] %v458_v31  ;;  %510 = vst [vmem:[%s808_s26 + $0x8] sm:$0xff] %v386_v32 }
  0xec   : > { %526 = vst [vmem:[%s808_s26 + $0x88] sm:$0xff] %v450_v34 }
  0xed   : > { %v666_v35 = vpop.f32.mrb[4].mxu0 }
  0xee   : > { %v407_v36 = vadd.f32 %v666_v35, %v803_v18  ;;  %v682_v37 = vpop.f32.mrb[4].mxu1  ;;  %v398_v38 = vpop.f32.mrb[5].mxu0 }
  0xef   : > { %v471_v39 = vadd.f32 %v682_v37, %v803_v18  ;;  %v399_v40 = vadd.f32 %v803_v18, %v398_v38  ;;  %v462_v41 = vpop.f32.mrb[5].mxu1  ;;  %v667_v42 = vpop.f32.mrb[6].mxu0 }
  0xf0   : > { %515 = vst [vmem:[%s808_s26 + $0x30] sm:$0xff] %v407_v36  ;;  %v463_v43 = vadd.f32 %v803_v18, %v462_v41  ;;  %v410_v44 = vadd.f32 %v667_v42, %v803_v18  ;;  %v683_v45 = vpop.f32.mrb[6].mxu1  ;;  %v401_v46 = vpop.f32.mrb[7].mxu0 }
  0xf1   : > { %531 = vst [vmem:[%s808_s26 + $0xb0] sm:$0xff] %v471_v39  ;;  %513 = vst [vmem:[%s808_s26 + $0x20] sm:$0xff] %v399_v40  ;;  %v474_v47 = vadd.f32 %v683_v45, %v803_v18  ;;  %v402_v48 = vadd.f32 %v803_v18, %v401_v46  ;;  %v465_v49 = vpop.f32.mrb[7].mxu1 }
  0xf2   : > { %529 = vst [vmem:[%s808_s26 + $0xa0] sm:$0xff] %v463_v43  ;;  %516 = vst [vmem:[%s808_s26 + $0x38] sm:$0xff] %v410_v44  ;;  %v466_v50 = vadd.f32 %v803_v18, %v465_v49 }
  0xf3   : > { %532 = vst [vmem:[%s808_s26 + $0xb8] sm:$0xff] %v474_v47  ;;  %514 = vst [vmem:[%s808_s26 + $0x28] sm:$0xff] %v402_v48 }
  0xf4   : > { %530 = vst [vmem:[%s808_s26 + $0xa8] sm:$0xff] %v466_v50 }
  0xf5   : > { %v670_v51 = vpop.f32.mrb[8].mxu0 }
  0xf6   : > { %v423_v52 = vadd.f32 %v670_v51, %v803_v18  ;;  %v686_v53 = vpop.f32.mrb[8].mxu1  ;;  %v414_v54 = vpop.f32.mrb[9].mxu0 }
  0xf7   : > { %v487_v55 = vadd.f32 %v686_v53, %v803_v18  ;;  %v415_v56 = vadd.f32 %v803_v18, %v414_v54  ;;  %v478_v57 = vpop.f32.mrb[9].mxu1  ;;  %v671_v58 = vpop.f32.mrb[10].mxu0 }
  0xf8   : > { %519 = vst [vmem:[%s808_s26 + $0x50] sm:$0xff] %v423_v52  ;;  %v479_v59 = vadd.f32 %v803_v18, %v478_v57  ;;  %v426_v60 = vadd.f32 %v671_v58, %v803_v18  ;;  %v687_v61 = vpop.f32.mrb[10].mxu1  ;;  %v417_v62 = vpop.f32.mrb[11].mxu0 }
  0xf9   : > { %535 = vst [vmem:[%s808_s26 + $0xd0] sm:$0xff] %v487_v55  ;;  %517 = vst [vmem:[%s808_s26 + $0x40] sm:$0xff] %v415_v56  ;;  %v490_v63 = vadd.f32 %v687_v61, %v803_v18  ;;  %v418_v0 = vadd.f32 %v803_v18, %v417_v62  ;;  %v481_v1 = vpop.f32.mrb[11].mxu1 }
  0xfa   : > { %533 = vst [vmem:[%s808_s26 + $0xc0] sm:$0xff] %v479_v59  ;;  %520 = vst [vmem:[%s808_s26 + $0x58] sm:$0xff] %v426_v60  ;;  %v482_v2 = vadd.f32 %v803_v18, %v481_v1 }
  0xfb   : > { %536 = vst [vmem:[%s808_s26 + $0xd8] sm:$0xff] %v490_v63  ;;  %518 = vst [vmem:[%s808_s26 + $0x48] sm:$0xff] %v418_v0 }
  0xfc   : > { %534 = vst [vmem:[%s808_s26 + $0xc8] sm:$0xff] %v482_v2 }
  0xfd   : > { %v674_v3 = vpop.f32.mrb[12].mxu0 }
  0xfe   : > { %v439_v4 = vadd.f32 %v674_v3, %v803_v18  ;;  %v690_v5 = vpop.f32.mrb[12].mxu1  ;;  %v430_v6 = vpop.f32.mrb[13].mxu0 }
  0xff   : > { %v503_v7 = vadd.f32 %v690_v5, %v803_v18  ;;  %v431_v8 = vadd.f32 %v803_v18, %v430_v6  ;;  %v494_v9 = vpop.f32.mrb[13].mxu1  ;;  %v675_v10 = vpop.f32.mrb[14].mxu0 }
 0x100   : > { %523 = vst [vmem:[%s808_s26 + $0x70] sm:$0xff] %v439_v4  ;;  %v495_v11 = vadd.f32 %v803_v18, %v494_v9  ;;  %v442_v12 = vadd.f32 %v675_v10, %v803_v18  ;;  %v691_v13 = vpop.f32.mrb[14].mxu1  ;;  %v433_v14 = vpop.f32.mrb[15].mxu0 }
 0x101   : > { %539 = vst [vmem:[%s808_s26 + $0xf0] sm:$0xff] %v503_v7  ;;  %521 = vst [vmem:[%s808_s26 + $0x60] sm:$0xff] %v431_v8  ;;  %v506_v15 = vadd.f32 %v691_v13, %v803_v18  ;;  %v434_v16 = vadd.f32 %v803_v18, %v433_v14  ;;  %v497_v17 = vpop.f32.mrb[15].mxu1 }
 0x102   : > { %537 = vst [vmem:[%s808_s26 + $0xe0] sm:$0xff] %v495_v11  ;;  %524 = vst [vmem:[%s808_s26 + $0x78] sm:$0xff] %v442_v12  ;;  %v498_v19 = vadd.f32 %v803_v18, %v497_v17 }
 0x103   : > { %540 = vst [vmem:[%s808_s26 + $0xf8] sm:$0xff] %v506_v15  ;;  %522 = vst [vmem:[%s808_s26 + $0x68] sm:$0xff] %v434_v16 }
 0x104   : > { %538 = vst [vmem:[%s808_s26 + $0xe8] sm:$0xff] %v498_v19 }
 0x105 PF: > { %s13_s12 = sadd.s32 1, %s726_s12  }
 0x106   : > { %p10_p4 = scmp.ge.s32.totalorder %s13_s12, 4  }
 0x108   :  { %12 = sbr.rel (!%p10_p4) target bundleno = 1 (0x1), region = 62 }

</bundles_post_ra>
